<compile_context>
chip_gen: v6e
topology: v6e:2x2x1
jax: 0.10.0
libtpu: 0.0.40
codegen_flags: <defaults>
</compile_context>

<pallas_src>
from functools import partial

import jax
import jax.numpy as jnp
from jax import lax
from jax.experimental import pallas as pl
from jax.experimental.pallas import tpu as pltpu


def _round_up(n, m):
    return (n + m - 1) // m * m


def _full(shape):
    nd = len(shape)
    return pl.BlockSpec(tuple(shape), lambda i, _nd=nd: (0,) * _nd)


def _bn_affine(s, ssq, gamma, beta, count, eps):
    """Training-mode BatchNorm -> per-channel (scale, shift) from partial sums.

    Batch statistics, biased variance, eps=1e-5 (PyTorch forward semantics).
    """
    inv_n = 1.0 / count
    mean = s * inv_n
    var = jnp.maximum(ssq * inv_n - mean * mean, 0.0)
    inv = lax.rsqrt(var + eps)
    scale = gamma * inv
    shift = beta - mean * scale
    return scale, shift


def _downlayer_kernel(x_ref, temb_ref, fcw_ref, fcb_ref, w1_ref, w2_ref,
                      wsc_ref, bsc_ref, bn_ref, min_ref, mout_ref, sel_ref,
                      o_ref,
                      h1_scr, res_scr, h2_scr, a1e_scr,
                      *, B, Cout, Wp, HF, pad0, count, eps,
                      has_shortcut, downsample):
    m_in = min_ref[...]           # (1, Lx)  1.0 at true image pixels (keeps pad 0)
    m_out = mout_ref[...]         # (1, HF)  1.0 at valid output columns
    w1 = w1_ref[...]              # (Cop, 9*Cip) bf16, pre-packed
    w2 = w2_ref[...]              # (Cop, 9*Cop) bf16, pre-packed
    fcw = fcw_ref[...]            # (Cip, D)  f32
    fcb = fcb_ref[...]            # (Cip, 1)  f32

    offs = [kh * Wp + kw for kh in range(3) for kw in range(3)]   # 9 tap offsets

    # ---------------- Phase 1: temb add + conv1 + shortcut + BN1 sums --------
    s1 = s1sq = None
    for b in range(B):
        # fc(temb): tiny -> VPU multiply + lane reduction (no matmul needed).
        t = jnp.sum(fcw * temb_ref[b], axis=1, keepdims=True) + fcb   # (Cip, 1)
        # PyTorch in-place `x += fc(temb)[:, :, None, None]`; mask keeps the
        # conv zero-padding exactly zero.
        xt = x_ref[b] + t * m_in                                      # (Cip, Lx)
        # conv1 as ONE K-packed matmul: 9 flat-shifted tap slices stacked along
        # the contraction axis (pieces are 8-row aligned f32 -> cheap copies),
        # one cast to bf16, one MXU dot with f32 accumulation.  The conv bias
        # is skipped: training-mode BN mean subtraction cancels it exactly.
        taps = jnp.concatenate([xt[:, o:o + HF] for o in offs],
                               axis=0).astype(jnp.bfloat16)           # (9Cip, HF)
        h1 = jnp.dot(w1, taps, preferred_element_type=jnp.float32) * m_out
        h1_scr[b] = h1
        # Residual reads the temb-shifted input (centre tap) -- PyTorch's
        # `res = x` aliases the tensor that `x += ...` modified in place.
        if has_shortcut:
            centre = xt[:, Wp + 1:Wp + 1 + HF].astype(jnp.bfloat16)
            res_scr[b] = (jnp.dot(wsc_ref[...], centre,
                                  preferred_element_type=jnp.float32)
                          + bsc_ref[...])
        else:
            res_scr[b] = xt[:, Wp + 1:Wp + 1 + HF]
        ps = jnp.sum(h1, axis=-1, keepdims=True)
        psq = jnp.sum(h1 * h1, axis=-1, keepdims=True)
        s1 = ps if s1 is None else s1 + ps
        s1sq = psq if s1sq is None else s1sq + psq

    scale1, shift1 = _bn_affine(s1, s1sq, bn_ref[:, 0:1], bn_ref[:, 1:2],
                                count, eps)

    # ---------------- Phase 2: BN1 + ReLU + conv2 + BN2 sums -----------------
    # a1e_scr holds one zero-padded activation image; the zero border is written
    # once, the valid slab (at the lane-aligned offset pad0) is rewritten per b.
    a1e_scr[...] = jnp.zeros_like(a1e_scr)
    base2 = pad0 - (Wp + 1)
    s2 = s2sq = None
    for b in range(B):
        a1 = jnp.maximum(h1_scr[b] * scale1 + shift1, 0.0) * m_out    # (Cop, HF)
        a1e_scr[:, pad0:pad0 + HF] = a1
        taps = jnp.concatenate(
            [a1e_scr[:, base2 + o:base2 + o + HF] for o in offs],
            axis=0).astype(jnp.bfloat16)                              # (9Cop, HF)
        h2 = jnp.dot(w2, taps, preferred_element_type=jnp.float32) * m_out
        h2_scr[b] = h2
        ps = jnp.sum(h2, axis=-1, keepdims=True)
        psq = jnp.sum(h2 * h2, axis=-1, keepdims=True)
        s2 = ps if s2 is None else s2 + ps
        s2sq = psq if s2sq is None else s2sq + psq

    scale2, shift2 = _bn_affine(s2, s2sq, bn_ref[:, 2:3], bn_ref[:, 3:4],
                                count, eps)

    # ---------------- Phase 3: BN2 + ReLU + residual (+ 2x2 max pool) --------
    sel = sel_ref[...]            # (Ksel, P) 0/1 selection matrix (f32 -> exact)
    for b in range(B):
        y = jnp.maximum(h2_scr[b] * scale2 + shift2, 0.0) + res_scr[b]
        if downsample:
            kz = HF - Wp - 1      # 2x2 neighbour max via flat-shifted slices
            z = jnp.maximum(
                jnp.maximum(y[:, 0:kz], y[:, 1:kz + 1]),
                jnp.maximum(y[:, Wp:Wp + kz], y[:, Wp + 1:Wp + 1 + kz]))
        else:
            z = y
        # Valid-column / pooled-position selection as one exact f32 matmul;
        # the row slice drops the zero-padded fake output channels.
        o_ref[b] = jnp.dot(z, sel, preferred_element_type=jnp.float32)[0:Cout, :]


class DownLayerPallas:
    """Forward-pass equivalent of the PyTorch DownLayer (training-mode BN)."""

    def __init__(self, key, in_channels, out_channels, time_emb_dim=16,
                 downsample=False):
        ks = jax.random.split(key, 8)
        s = 0.1
        self.in_channels = in_channels
        self.out_channels = out_channels
        self.downsample = downsample
        self.has_shortcut = in_channels != out_channels
        cip = _round_up(in_channels, 8)
        cop = _round_up(out_channels, 8)
        self.cin_pad, self.cout_pad = cip, cop

        # PyTorch-shaped parameters (deterministic synthetic init).
        conv1_w = s * jax.random.normal(ks[0], (out_channels, in_channels, 3, 3), jnp.float32)
        self.conv1_b = s * jax.random.normal(ks[1], (out_channels,), jnp.float32)  # unused: cancelled by BN1 batch stats
        conv2_w = s * jax.random.normal(ks[2], (out_channels, out_channels, 3, 3), jnp.float32)
        self.conv2_b = s * jax.random.normal(ks[3], (out_channels,), jnp.float32)  # unused: cancelled by BN2 batch stats
        fc_w = s * jax.random.normal(ks[4], (in_channels, time_emb_dim), jnp.float32)
        fc_b = s * jax.random.normal(ks[5], (in_channels,), jnp.float32)
        bn1_g = jnp.ones((out_channels,), jnp.float32)
        bn1_b = jnp.zeros((out_channels,), jnp.float32)
        bn2_g = jnp.ones((out_channels,), jnp.float32)
        bn2_b = jnp.zeros((out_channels,), jnp.float32)
        if self.has_shortcut:
            sc_w = s * jax.random.normal(ks[6], (out_channels, in_channels, 1, 1), jnp.float32)
            sc_b = s * jax.random.normal(ks[7], (out_channels,), jnp.float32)
        else:
            sc_w = jnp.zeros((out_channels, in_channels, 1, 1), jnp.float32)
            sc_b = jnp.zeros((out_channels,), jnp.float32)

        # ---- kernel-ready operands: channel-padded, K-packed, bf16 (built once)
        def pad_oi(w, co, ci):
            return jnp.pad(w, ((0, co - w.shape[0]), (0, ci - w.shape[1]),
                               (0, 0), (0, 0)))

        # (Co,Ci,3,3) -> (Co,kh,kw,Ci) -> (Co, 9*Ci); contraction index = k*Ci+ci
        self.w1p = jnp.transpose(pad_oi(conv1_w, cop, cip),
                                 (0, 2, 3, 1)).reshape(cop, 9 * cip).astype(jnp.bfloat16)
        self.w2p = jnp.transpose(pad_oi(conv2_w, cop, cop),
                                 (0, 2, 3, 1)).reshape(cop, 9 * cop).astype(jnp.bfloat16)
        self.wsc = jnp.pad(sc_w.reshape(out_channels, in_channels),
                           ((0, cop - out_channels), (0, cip - in_channels))
                           ).astype(jnp.bfloat16)
        self.bsc = jnp.pad(sc_b, (0, cop - out_channels)).reshape(cop, 1)
        self.fcw = jnp.pad(fc_w, ((0, cip - in_channels), (0, 0)))
        self.fcb = jnp.pad(fc_b, (0, cip - in_channels)).reshape(cip, 1)
        # BN affine params packed into one (Cop, 4) ref: [g1, b1, g2, b2];
        # padded channels get gamma=0 so they stay exactly zero end-to-end.
        self.bnp = jnp.stack(
            [jnp.pad(p, (0, cop - out_channels))
             for p in (bn1_g, bn1_b, bn2_g, bn2_b)], axis=1)

    def __call__(self, x_nchw, temb):
        B, Cin, H, W = x_nchw.shape
        assert Cin == self.in_channels
        Cout = self.out_channels
        cip, cop = self.cin_pad, self.cout_pad
        Wp = W + 2
        HF = H * Wp                      # flat output grid (last 2 cols per row = garbage)
        Lx = (H + 3) * Wp                # padded+flattened input (extra bottom row = guard)
        D = temb.shape[-1]
        count = float(B * H * W)

        # Single pad: channel pad to a sublane multiple + spatial ((1,2),(1,1)).
        x_ext = jnp.pad(x_nchw.astype(jnp.float32),
                        ((0, 0), (0, cip - Cin), (1, 2), (1, 1))).reshape(B, cip, Lx)
        temb3 = temb.astype(jnp.float32).reshape(B, 1, D)

        # Trace-time constant masks.
        interior = jnp.zeros((H + 3, Wp), jnp.float32).at[1:H + 1, 1:W + 1].set(1.0)
        m_in = interior.reshape(1, Lx)
        col = jnp.zeros((Wp,), jnp.float32).at[0:W].set(1.0)
        m_out = jnp.tile(col, H).reshape(1, HF)

        # 0/1 selection matrix: picks pooled top-left positions (downsample) or
        # the valid columns (no downsample) out of the flat output grid.
        if self.downsample:
            P = (H // 2) * (W // 2)
            ksel = HF - Wp - 1
            fp = (2 * jnp.arange(H // 2)[:, None] * Wp
                  + 2 * jnp.arange(W // 2)[None, :]).reshape(P)
        else:
            P = H * W
            ksel = HF
            fp = (jnp.arange(H)[:, None] * Wp + jnp.arange(W)[None, :]).reshape(P)
        sel = (jnp.arange(ksel)[:, None] == fp[None, :]).astype(jnp.float32)

        pad0 = _round_up(Wp + 1, 128)     # lane-aligned slab offset in a1 scratch
        lx2 = pad0 + HF + 2 * Wp + 2

        kernel = partial(_downlayer_kernel,
                         B=B, Cout=Cout, Wp=Wp, HF=HF, pad0=pad0,
                         count=count, eps=1e-5,
                         has_shortcut=self.has_shortcut,
                         downsample=self.downsample)

        operands = (x_ext, temb3, self.fcw, self.fcb, self.w1p, self.w2p,
                    self.wsc, self.bsc, self.bnp, m_in, m_out, sel)

        out = pl.pallas_call(
            kernel,
            grid=(1,),
            in_specs=[_full(a.shape) for a in operands],
            out_specs=_full((B, Cout, P)),
            out_shape=jax.ShapeDtypeStruct((B, Cout, P), jnp.float32),
            scratch_shapes=[pltpu.VMEM((B, cop, HF), jnp.float32),   # h1
                            pltpu.VMEM((B, cop, HF), jnp.float32),   # res
                            pltpu.VMEM((B, cop, HF), jnp.float32),   # h2
                            pltpu.VMEM((cop, lx2), jnp.float32)],    # padded a1
            compiler_params=pltpu.CompilerParams(
                dimension_semantics=("arbitrary",),
                vmem_limit_bytes=32 * 1024 * 1024),
        )(*operands)

        if self.downsample:
            return out.reshape(B, Cout, H // 2, W // 2)
        return out.reshape(B, Cout, H, W)


if __name__ == "__main__":
    key = jax.random.PRNGKey(0)
    kx, kt, kp = jax.random.split(key, 3)

    B, Cin, Cout, H, W, D = 2, 4, 8, 16, 16, 16
    x = jax.random.normal(kx, (B, Cin, H, W), jnp.float32)          # NCHW (PyTorch)
    temb = jax.random.normal(kt, (B, D), jnp.float32)

    layer = DownLayerPallas(kp, Cin, Cout, time_emb_dim=D, downsample=True)
    out = jax.block_until_ready(layer(x, temb))

    assert out.shape == (B, Cout, H // 2, W // 2), out.shape
    assert out.dtype == jnp.float32
    assert bool(jnp.all(jnp.isfinite(out)))
    print("KERNEL_OK")
</pallas_src>

<mosaic_0001>
module attributes {stable_mosaic.version = 11 : i64} {
  func.func @_downlayer_kernel(%arg0: i32, %arg1: memref<2x8x342xf32, #tpu.memory_space<vmem>>, %arg2: memref<2x1x16xf32, #tpu.memory_space<vmem>>, %arg3: memref<8x16xf32, #tpu.memory_space<vmem>>, %arg4: memref<8x1xf32, #tpu.memory_space<vmem>>, %arg5: memref<8x72xbf16, #tpu.memory_space<vmem>>, %arg6: memref<8x72xbf16, #tpu.memory_space<vmem>>, %arg7: memref<8x8xbf16, #tpu.memory_space<vmem>>, %arg8: memref<8x1xf32, #tpu.memory_space<vmem>>, %arg9: memref<8x4xf32, #tpu.memory_space<vmem>>, %arg10: memref<1x342xf32, #tpu.memory_space<vmem>>, %arg11: memref<1x288xf32, #tpu.memory_space<vmem>>, %arg12: memref<269x64xf32, #tpu.memory_space<vmem>>, %arg13: memref<2x8x64xf32, #tpu.memory_space<vmem>>, %arg14: memref<2x8x288xf32, #tpu.memory_space<vmem>>, %arg15: memref<2x8x288xf32, #tpu.memory_space<vmem>>, %arg16: memref<2x8x288xf32, #tpu.memory_space<vmem>>, %arg17: memref<8x454xf32, #tpu.memory_space<vmem>>) attributes {dimension_semantics = [#tpu.dimension_semantics<arbitrary>], iteration_bounds = array<i64: 1>, scalar_prefetch = 0 : i64, scratch_operands = 4 : i64, tpu.core_type = #tpu.core_type<tc>, window_params = [{pipeline_mode = #tpu.pipeline_mode<synchronous>, transform_indices = @transform_0, window_bounds = array<i64: 2, 8, 342>}, {pipeline_mode = #tpu.pipeline_mode<synchronous>, transform_indices = @transform_1, window_bounds = array<i64: 2, 1, 16>}, {pipeline_mode = #tpu.pipeline_mode<synchronous>, transform_indices = @transform_2, window_bounds = array<i64: 8, 16>}, {pipeline_mode = #tpu.pipeline_mode<synchronous>, transform_indices = @transform_3, window_bounds = array<i64: 8, 1>}, {pipeline_mode = #tpu.pipeline_mode<synchronous>, transform_indices = @transform_4, window_bounds = array<i64: 8, 72>}, {pipeline_mode = #tpu.pipeline_mode<synchronous>, transform_indices = @transform_5, window_bounds = array<i64: 8, 72>}, {pipeline_mode = #tpu.pipeline_mode<synchronous>, transform_indices = @transform_6, window_bounds = array<i64: 8, 8>}, {pipeline_mode = #tpu.pipeline_mode<synchronous>, transform_indices = @transform_7, window_bounds = array<i64: 8, 1>}, {pipeline_mode = #tpu.pipeline_mode<synchronous>, transform_indices = @transform_8, window_bounds = array<i64: 8, 4>}, {pipeline_mode = #tpu.pipeline_mode<synchronous>, transform_indices = @transform_9, window_bounds = array<i64: 1, 342>}, {pipeline_mode = #tpu.pipeline_mode<synchronous>, transform_indices = @transform_10, window_bounds = array<i64: 1, 288>}, {pipeline_mode = #tpu.pipeline_mode<synchronous>, transform_indices = @transform_11, window_bounds = array<i64: 269, 64>}, {pipeline_mode = #tpu.pipeline_mode<synchronous>, transform_indices = @transform_12, window_bounds = array<i64: 2, 8, 64>}]} {
    %c0 = arith.constant 0 : index
    %c0_0 = arith.constant 0 : index
    %0 = vector.load %arg10[%c0, %c0_0] : memref<1x342xf32, #tpu.memory_space<vmem>>, vector<1x342xf32>
    %c0_1 = arith.constant 0 : index
    %c0_2 = arith.constant 0 : index
    %1 = vector.load %arg11[%c0_1, %c0_2] : memref<1x288xf32, #tpu.memory_space<vmem>>, vector<1x288xf32>
    %c0_3 = arith.constant 0 : index
    %c0_4 = arith.constant 0 : index
    %2 = vector.load %arg5[%c0_3, %c0_4] : memref<8x72xbf16, #tpu.memory_space<vmem>>, vector<8x72xbf16>
    %c0_5 = arith.constant 0 : index
    %c0_6 = arith.constant 0 : index
    %3 = vector.load %arg6[%c0_5, %c0_6] : memref<8x72xbf16, #tpu.memory_space<vmem>>, vector<8x72xbf16>
    %c0_7 = arith.constant 0 : index
    %c0_8 = arith.constant 0 : index
    %4 = vector.load %arg3[%c0_7, %c0_8] : memref<8x16xf32, #tpu.memory_space<vmem>>, vector<8x16xf32>
    %c0_9 = arith.constant 0 : index
    %c0_10 = arith.constant 0 : index
    %5 = vector.load %arg4[%c0_9, %c0_10] : memref<8x1xf32, #tpu.memory_space<vmem>>, vector<8x1xf32>
    %c0_11 = arith.constant 0 : index
    %c0_12 = arith.constant 0 : index
    %c0_13 = arith.constant 0 : index
    %6 = vector.load %arg2[%c0_11, %c0_12, %c0_13] : memref<2x1x16xf32, #tpu.memory_space<vmem>>, vector<1x1x16xf32>
    %7 = vector.shape_cast %6 : vector<1x1x16xf32> to vector<1x16xf32>
    %8 = vector.broadcast %7 : vector<1x16xf32> to vector<8x16xf32>
    %9 = arith.mulf %4, %8 : vector<8x16xf32>
    %cst = arith.constant dense<0.000000e+00> : vector<8xf32>
    %10 = vector.multi_reduction <add>, %9, %cst [1] : vector<8x16xf32> to vector<8xf32>
    %11 = vector.shape_cast %10 : vector<8xf32> to vector<8x1xf32>
    %12 = arith.addf %11, %5 : vector<8x1xf32>
    %c0_14 = arith.constant 0 : index
    %c0_15 = arith.constant 0 : index
    %c0_16 = arith.constant 0 : index
    %13 = vector.load %arg1[%c0_14, %c0_15, %c0_16] : memref<2x8x342xf32, #tpu.memory_space<vmem>>, vector<1x8x342xf32>
    %14 = vector.shape_cast %13 : vector<1x8x342xf32> to vector<8x342xf32>
    %15 = vector.broadcast %12 : vector<8x1xf32> to vector<8x342xf32>
    %16 = vector.broadcast %0 : vector<1x342xf32> to vector<8x342xf32>
    %17 = arith.mulf %15, %16 : vector<8x342xf32>
    %18 = arith.addf %14, %17 : vector<8x342xf32>
    %19 = vector.extract_strided_slice %18 {offsets = [0, 0], sizes = [8, 288], strides = [1, 1]} : vector<8x342xf32> to vector<8x288xf32>
    %20 = vector.extract_strided_slice %18 {offsets = [0, 1], sizes = [8, 288], strides = [1, 1]} : vector<8x342xf32> to vector<8x288xf32>
    %21 = vector.extract_strided_slice %18 {offsets = [0, 2], sizes = [8, 288], strides = [1, 1]} : vector<8x342xf32> to vector<8x288xf32>
    %22 = vector.extract_strided_slice %18 {offsets = [0, 18], sizes = [8, 288], strides = [1, 1]} : vector<8x342xf32> to vector<8x288xf32>
    %23 = vector.extract_strided_slice %18 {offsets = [0, 19], sizes = [8, 288], strides = [1, 1]} : vector<8x342xf32> to vector<8x288xf32>
    %24 = vector.extract_strided_slice %18 {offsets = [0, 20], sizes = [8, 288], strides = [1, 1]} : vector<8x342xf32> to vector<8x288xf32>
    %25 = vector.extract_strided_slice %18 {offsets = [0, 36], sizes = [8, 288], strides = [1, 1]} : vector<8x342xf32> to vector<8x288xf32>
    %26 = vector.extract_strided_slice %18 {offsets = [0, 37], sizes = [8, 288], strides = [1, 1]} : vector<8x342xf32> to vector<8x288xf32>
    %27 = vector.extract_strided_slice %18 {offsets = [0, 38], sizes = [8, 288], strides = [1, 1]} : vector<8x342xf32> to vector<8x288xf32>
    %28 = tpu.concatenate %19, %20, %21, %22, %23, %24, %25, %26, %27 in 0 : vector<8x288xf32>, vector<8x288xf32>, vector<8x288xf32>, vector<8x288xf32>, vector<8x288xf32>, vector<8x288xf32>, vector<8x288xf32>, vector<8x288xf32>, vector<8x288xf32> -> vector<72x288xf32>
    %29 = arith.truncf %28 : vector<72x288xf32> to vector<72x288xbf16>
    %cst_17 = arith.constant dense<0.000000e+00> : vector<8x288xf32>
    %30 = tpu.matmul %2, %29, %cst_17 {dimension_numbers = #tpu.dot_dimension_numbers<[1], [0], [0], [1], [0, 0, 1, 1], [], []>} : vector<8x72xbf16>, vector<72x288xbf16>, vector<8x288xf32> -> vector<8x288xf32>
    %31 = vector.broadcast %1 : vector<1x288xf32> to vector<8x288xf32>
    %32 = arith.mulf %30, %31 : vector<8x288xf32>
    %c0_18 = arith.constant 0 : index
    %c0_19 = arith.constant 0 : index
    %c0_20 = arith.constant 0 : index
    %33 = vector.load %arg14[%c0_18, %c0_19, %c0_20] : memref<2x8x288xf32, #tpu.memory_space<vmem>>, vector<1x8x288xf32>
    %34 = vector.shape_cast %33 : vector<1x8x288xf32> to vector<8x288xf32>
    %35 = vector.shape_cast %32 : vector<8x288xf32> to vector<1x8x288xf32>
    tpu.vector_store %arg14[%c0_18, %c0_19, %c0_20], %35 {strides = array<i32>} : memref<2x8x288xf32, #tpu.memory_space<vmem>>, vector<1x8x288xf32>,
    %36 = vector.extract_strided_slice %18 {offsets = [0, 19], sizes = [8, 288], strides = [1, 1]} : vector<8x342xf32> to vector<8x288xf32>
    %37 = arith.truncf %36 : vector<8x288xf32> to vector<8x288xbf16>
    %c0_21 = arith.constant 0 : index
    %c0_22 = arith.constant 0 : index
    %38 = vector.load %arg7[%c0_21, %c0_22] : memref<8x8xbf16, #tpu.memory_space<vmem>>, vector<8x8xbf16>
    %cst_23 = arith.constant dense<0.000000e+00> : vector<8x288xf32>
    %39 = tpu.matmul %38, %37, %cst_23 {dimension_numbers = #tpu.dot_dimension_numbers<[1], [0], [0], [1], [0, 0, 1, 1], [], []>} : vector<8x8xbf16>, vector<8x288xbf16>, vector<8x288xf32> -> vector<8x288xf32>
    %c0_24 = arith.constant 0 : index
    %c0_25 = arith.constant 0 : index
    %40 = vector.load %arg8[%c0_24, %c0_25] : memref<8x1xf32, #tpu.memory_space<vmem>>, vector<8x1xf32>
    %41 = vector.broadcast %40 : vector<8x1xf32> to vector<8x288xf32>
    %42 = arith.addf %39, %41 : vector<8x288xf32>
    %c0_26 = arith.constant 0 : index
    %c0_27 = arith.constant 0 : index
    %c0_28 = arith.constant 0 : index
    %43 = vector.load %arg15[%c0_26, %c0_27, %c0_28] : memref<2x8x288xf32, #tpu.memory_space<vmem>>, vector<1x8x288xf32>
    %44 = vector.shape_cast %43 : vector<1x8x288xf32> to vector<8x288xf32>
    %45 = vector.shape_cast %42 : vector<8x288xf32> to vector<1x8x288xf32>
    tpu.vector_store %arg15[%c0_26, %c0_27, %c0_28], %45 {strides = array<i32>} : memref<2x8x288xf32, #tpu.memory_space<vmem>>, vector<1x8x288xf32>,
    %cst_29 = arith.constant dense<0.000000e+00> : vector<8xf32>
    %46 = vector.multi_reduction <add>, %32, %cst_29 [1] : vector<8x288xf32> to vector<8xf32>
    %47 = vector.shape_cast %46 : vector<8xf32> to vector<8x1xf32>
    %48 = arith.mulf %32, %32 : vector<8x288xf32>
    %cst_30 = arith.constant dense<0.000000e+00> : vector<8xf32>
    %49 = vector.multi_reduction <add>, %48, %cst_30 [1] : vector<8x288xf32> to vector<8xf32>
    %50 = vector.shape_cast %49 : vector<8xf32> to vector<8x1xf32>
    %c1 = arith.constant 1 : index
    %c0_31 = arith.constant 0 : index
    %c0_32 = arith.constant 0 : index
    %51 = vector.load %arg2[%c1, %c0_31, %c0_32] : memref<2x1x16xf32, #tpu.memory_space<vmem>>, vector<1x1x16xf32>
    %52 = vector.shape_cast %51 : vector<1x1x16xf32> to vector<1x16xf32>
    %53 = vector.broadcast %52 : vector<1x16xf32> to vector<8x16xf32>
    %54 = arith.mulf %4, %53 : vector<8x16xf32>
    %cst_33 = arith.constant dense<0.000000e+00> : vector<8xf32>
    %55 = vector.multi_reduction <add>, %54, %cst_33 [1] : vector<8x16xf32> to vector<8xf32>
    %56 = vector.shape_cast %55 : vector<8xf32> to vector<8x1xf32>
    %57 = arith.addf %56, %5 : vector<8x1xf32>
    %c1_34 = arith.constant 1 : index
    %c0_35 = arith.constant 0 : index
    %c0_36 = arith.constant 0 : index
    %58 = vector.load %arg1[%c1_34, %c0_35, %c0_36] : memref<2x8x342xf32, #tpu.memory_space<vmem>>, vector<1x8x342xf32>
    %59 = vector.shape_cast %58 : vector<1x8x342xf32> to vector<8x342xf32>
    %60 = vector.broadcast %57 : vector<8x1xf32> to vector<8x342xf32>
    %61 = vector.broadcast %0 : vector<1x342xf32> to vector<8x342xf32>
    %62 = arith.mulf %60, %61 : vector<8x342xf32>
    %63 = arith.addf %59, %62 : vector<8x342xf32>
    %64 = vector.extract_strided_slice %63 {offsets = [0, 0], sizes = [8, 288], strides = [1, 1]} : vector<8x342xf32> to vector<8x288xf32>
    %65 = vector.extract_strided_slice %63 {offsets = [0, 1], sizes = [8, 288], strides = [1, 1]} : vector<8x342xf32> to vector<8x288xf32>
    %66 = vector.extract_strided_slice %63 {offsets = [0, 2], sizes = [8, 288], strides = [1, 1]} : vector<8x342xf32> to vector<8x288xf32>
    %67 = vector.extract_strided_slice %63 {offsets = [0, 18], sizes = [8, 288], strides = [1, 1]} : vector<8x342xf32> to vector<8x288xf32>
    %68 = vector.extract_strided_slice %63 {offsets = [0, 19], sizes = [8, 288], strides = [1, 1]} : vector<8x342xf32> to vector<8x288xf32>
    %69 = vector.extract_strided_slice %63 {offsets = [0, 20], sizes = [8, 288], strides = [1, 1]} : vector<8x342xf32> to vector<8x288xf32>
    %70 = vector.extract_strided_slice %63 {offsets = [0, 36], sizes = [8, 288], strides = [1, 1]} : vector<8x342xf32> to vector<8x288xf32>
    %71 = vector.extract_strided_slice %63 {offsets = [0, 37], sizes = [8, 288], strides = [1, 1]} : vector<8x342xf32> to vector<8x288xf32>
    %72 = vector.extract_strided_slice %63 {offsets = [0, 38], sizes = [8, 288], strides = [1, 1]} : vector<8x342xf32> to vector<8x288xf32>
    %73 = tpu.concatenate %64, %65, %66, %67, %68, %69, %70, %71, %72 in 0 : vector<8x288xf32>, vector<8x288xf32>, vector<8x288xf32>, vector<8x288xf32>, vector<8x288xf32>, vector<8x288xf32>, vector<8x288xf32>, vector<8x288xf32>, vector<8x288xf32> -> vector<72x288xf32>
    %74 = arith.truncf %73 : vector<72x288xf32> to vector<72x288xbf16>
    %cst_37 = arith.constant dense<0.000000e+00> : vector<8x288xf32>
    %75 = tpu.matmul %2, %74, %cst_37 {dimension_numbers = #tpu.dot_dimension_numbers<[1], [0], [0], [1], [0, 0, 1, 1], [], []>} : vector<8x72xbf16>, vector<72x288xbf16>, vector<8x288xf32> -> vector<8x288xf32>
    %76 = vector.broadcast %1 : vector<1x288xf32> to vector<8x288xf32>
    %77 = arith.mulf %75, %76 : vector<8x288xf32>
    %c1_38 = arith.constant 1 : index
    %c0_39 = arith.constant 0 : index
    %c0_40 = arith.constant 0 : index
    %78 = vector.load %arg14[%c1_38, %c0_39, %c0_40] : memref<2x8x288xf32, #tpu.memory_space<vmem>>, vector<1x8x288xf32>
    %79 = vector.shape_cast %78 : vector<1x8x288xf32> to vector<8x288xf32>
    %80 = vector.shape_cast %77 : vector<8x288xf32> to vector<1x8x288xf32>
    tpu.vector_store %arg14[%c1_38, %c0_39, %c0_40], %80 {strides = array<i32>} : memref<2x8x288xf32, #tpu.memory_space<vmem>>, vector<1x8x288xf32>,
    %81 = vector.extract_strided_slice %63 {offsets = [0, 19], sizes = [8, 288], strides = [1, 1]} : vector<8x342xf32> to vector<8x288xf32>
    %82 = arith.truncf %81 : vector<8x288xf32> to vector<8x288xbf16>
    %c0_41 = arith.constant 0 : index
    %c0_42 = arith.constant 0 : index
    %83 = vector.load %arg7[%c0_41, %c0_42] : memref<8x8xbf16, #tpu.memory_space<vmem>>, vector<8x8xbf16>
    %cst_43 = arith.constant dense<0.000000e+00> : vector<8x288xf32>
    %84 = tpu.matmul %83, %82, %cst_43 {dimension_numbers = #tpu.dot_dimension_numbers<[1], [0], [0], [1], [0, 0, 1, 1], [], []>} : vector<8x8xbf16>, vector<8x288xbf16>, vector<8x288xf32> -> vector<8x288xf32>
    %c0_44 = arith.constant 0 : index
    %c0_45 = arith.constant 0 : index
    %85 = vector.load %arg8[%c0_44, %c0_45] : memref<8x1xf32, #tpu.memory_space<vmem>>, vector<8x1xf32>
    %86 = vector.broadcast %85 : vector<8x1xf32> to vector<8x288xf32>
    %87 = arith.addf %84, %86 : vector<8x288xf32>
    %c1_46 = arith.constant 1 : index
    %c0_47 = arith.constant 0 : index
    %c0_48 = arith.constant 0 : index
    %88 = vector.load %arg15[%c1_46, %c0_47, %c0_48] : memref<2x8x288xf32, #tpu.memory_space<vmem>>, vector<1x8x288xf32>
    %89 = vector.shape_cast %88 : vector<1x8x288xf32> to vector<8x288xf32>
    %90 = vector.shape_cast %87 : vector<8x288xf32> to vector<1x8x288xf32>
    tpu.vector_store %arg15[%c1_46, %c0_47, %c0_48], %90 {strides = array<i32>} : memref<2x8x288xf32, #tpu.memory_space<vmem>>, vector<1x8x288xf32>,
    %cst_49 = arith.constant dense<0.000000e+00> : vector<8xf32>
    %91 = vector.multi_reduction <add>, %77, %cst_49 [1] : vector<8x288xf32> to vector<8xf32>
    %92 = vector.shape_cast %91 : vector<8xf32> to vector<8x1xf32>
    %93 = arith.mulf %77, %77 : vector<8x288xf32>
    %cst_50 = arith.constant dense<0.000000e+00> : vector<8xf32>
    %94 = vector.multi_reduction <add>, %93, %cst_50 [1] : vector<8x288xf32> to vector<8xf32>
    %95 = vector.shape_cast %94 : vector<8xf32> to vector<8x1xf32>
    %96 = arith.addf %47, %92 : vector<8x1xf32>
    %97 = arith.addf %50, %95 : vector<8x1xf32>
    %c0_51 = arith.constant 0 : index
    %c0_52 = arith.constant 0 : index
    %98 = vector.load %arg9[%c0_51, %c0_52] : memref<8x4xf32, #tpu.memory_space<vmem>>, vector<8x1xf32>
    %c0_53 = arith.constant 0 : index
    %c1_54 = arith.constant 1 : index
    %99 = vector.load %arg9[%c0_53, %c1_54] : memref<8x4xf32, #tpu.memory_space<vmem>>, vector<8x1xf32>
    %cst_55 = arith.constant 0.001953125 : f32
    %100 = vector.broadcast %cst_55 : f32 to vector<8x1xf32>
    %101 = arith.mulf %96, %100 : vector<8x1xf32>
    %cst_56 = arith.constant 0.001953125 : f32
    %102 = vector.broadcast %cst_56 : f32 to vector<8x1xf32>
    %103 = arith.mulf %97, %102 : vector<8x1xf32>
    %104 = arith.mulf %101, %101 : vector<8x1xf32>
    %105 = arith.subf %103, %104 : vector<8x1xf32>
    %cst_57 = arith.constant 0.000000e+00 : f32
    %106 = vector.broadcast %cst_57 : f32 to vector<8x1xf32>
    %107 = arith.maximumf %105, %106 : vector<8x1xf32>
    %cst_58 = arith.constant 9.99999974E-6 : f32
    %108 = vector.broadcast %cst_58 : f32 to vector<8x1xf32>
    %109 = arith.addf %107, %108 : vector<8x1xf32>
    %110 = math.rsqrt %109 : vector<8x1xf32>
    %111 = arith.mulf %98, %110 : vector<8x1xf32>
    %112 = arith.mulf %101, %111 : vector<8x1xf32>
    %113 = arith.subf %99, %112 : vector<8x1xf32>
    %cst_59 = arith.constant 0.000000e+00 : f32
    %114 = vector.broadcast %cst_59 : f32 to vector<8x454xf32>
    %c0_60 = arith.constant 0 : index
    %c0_61 = arith.constant 0 : index
    %115 = vector.load %arg17[%c0_60, %c0_61] : memref<8x454xf32, #tpu.memory_space<vmem>>, vector<8x454xf32>
    tpu.vector_store %arg17[%c0_60, %c0_61], %114 {strides = array<i32>} : memref<8x454xf32, #tpu.memory_space<vmem>>, vector<8x454xf32>,
    %c0_62 = arith.constant 0 : index
    %c0_63 = arith.constant 0 : index
    %c0_64 = arith.constant 0 : index
    %116 = vector.load %arg14[%c0_62, %c0_63, %c0_64] : memref<2x8x288xf32, #tpu.memory_space<vmem>>, vector<1x8x288xf32>
    %117 = vector.shape_cast %116 : vector<1x8x288xf32> to vector<8x288xf32>
    %118 = vector.broadcast %111 : vector<8x1xf32> to vector<8x288xf32>
    %119 = arith.mulf %117, %118 : vector<8x288xf32>
    %120 = vector.broadcast %113 : vector<8x1xf32> to vector<8x288xf32>
    %121 = arith.addf %119, %120 : vector<8x288xf32>
    %cst_65 = arith.constant 0.000000e+00 : f32
    %122 = vector.broadcast %cst_65 : f32 to vector<8x288xf32>
    %123 = arith.maximumf %121, %122 : vector<8x288xf32>
    %124 = vector.broadcast %1 : vector<1x288xf32> to vector<8x288xf32>
    %125 = arith.mulf %123, %124 : vector<8x288xf32>
    %c0_66 = arith.constant 0 : index
    %c128 = arith.constant 128 : index
    %126 = vector.load %arg17[%c0_66, %c128] : memref<8x454xf32, #tpu.memory_space<vmem>>, vector<8x288xf32>
    tpu.vector_store %arg17[%c0_66, %c128], %125 {strides = array<i32>} : memref<8x454xf32, #tpu.memory_space<vmem>>, vector<8x288xf32>,
    %c0_67 = arith.constant 0 : index
    %c109 = arith.constant 109 : index
    %127 = vector.load %arg17[%c0_67, %c109] : memref<8x454xf32, #tpu.memory_space<vmem>>, vector<8x288xf32>
    %c0_68 = arith.constant 0 : index
    %c110 = arith.constant 110 : index
    %128 = vector.load %arg17[%c0_68, %c110] : memref<8x454xf32, #tpu.memory_space<vmem>>, vector<8x288xf32>
    %c0_69 = arith.constant 0 : index
    %c111 = arith.constant 111 : index
    %129 = vector.load %arg17[%c0_69, %c111] : memref<8x454xf32, #tpu.memory_space<vmem>>, vector<8x288xf32>
    %c0_70 = arith.constant 0 : index
    %c127 = arith.constant 127 : index
    %130 = vector.load %arg17[%c0_70, %c127] : memref<8x454xf32, #tpu.memory_space<vmem>>, vector<8x288xf32>
    %c0_71 = arith.constant 0 : index
    %c128_72 = arith.constant 128 : index
    %131 = vector.load %arg17[%c0_71, %c128_72] : memref<8x454xf32, #tpu.memory_space<vmem>>, vector<8x288xf32>
    %c0_73 = arith.constant 0 : index
    %c129 = arith.constant 129 : index
    %132 = vector.load %arg17[%c0_73, %c129] : memref<8x454xf32, #tpu.memory_space<vmem>>, vector<8x288xf32>
    %c0_74 = arith.constant 0 : index
    %c145 = arith.constant 145 : index
    %133 = vector.load %arg17[%c0_74, %c145] : memref<8x454xf32, #tpu.memory_space<vmem>>, vector<8x288xf32>
    %c0_75 = arith.constant 0 : index
    %c146 = arith.constant 146 : index
    %134 = vector.load %arg17[%c0_75, %c146] : memref<8x454xf32, #tpu.memory_space<vmem>>, vector<8x288xf32>
    %c0_76 = arith.constant 0 : index
    %c147 = arith.constant 147 : index
    %135 = vector.load %arg17[%c0_76, %c147] : memref<8x454xf32, #tpu.memory_space<vmem>>, vector<8x288xf32>
    %136 = tpu.concatenate %127, %128, %129, %130, %131, %132, %133, %134, %135 in 0 : vector<8x288xf32>, vector<8x288xf32>, vector<8x288xf32>, vector<8x288xf32>, vector<8x288xf32>, vector<8x288xf32>, vector<8x288xf32>, vector<8x288xf32>, vector<8x288xf32> -> vector<72x288xf32>
    %137 = arith.truncf %136 : vector<72x288xf32> to vector<72x288xbf16>
    %cst_77 = arith.constant dense<0.000000e+00> : vector<8x288xf32>
    %138 = tpu.matmul %3, %137, %cst_77 {dimension_numbers = #tpu.dot_dimension_numbers<[1], [0], [0], [1], [0, 0, 1, 1], [], []>} : vector<8x72xbf16>, vector<72x288xbf16>, vector<8x288xf32> -> vector<8x288xf32>
    %139 = vector.broadcast %1 : vector<1x288xf32> to vector<8x288xf32>
    %140 = arith.mulf %138, %139 : vector<8x288xf32>
    %c0_78 = arith.constant 0 : index
    %c0_79 = arith.constant 0 : index
    %c0_80 = arith.constant 0 : index
    %141 = vector.load %arg16[%c0_78, %c0_79, %c0_80] : memref<2x8x288xf32, #tpu.memory_space<vmem>>, vector<1x8x288xf32>
    %142 = vector.shape_cast %141 : vector<1x8x288xf32> to vector<8x288xf32>
    %143 = vector.shape_cast %140 : vector<8x288xf32> to vector<1x8x288xf32>
    tpu.vector_store %arg16[%c0_78, %c0_79, %c0_80], %143 {strides = array<i32>} : memref<2x8x288xf32, #tpu.memory_space<vmem>>, vector<1x8x288xf32>,
    %cst_81 = arith.constant dense<0.000000e+00> : vector<8xf32>
    %144 = vector.multi_reduction <add>, %140, %cst_81 [1] : vector<8x288xf32> to vector<8xf32>
    %145 = vector.shape_cast %144 : vector<8xf32> to vector<8x1xf32>
    %146 = arith.mulf %140, %140 : vector<8x288xf32>
    %cst_82 = arith.constant dense<0.000000e+00> : vector<8xf32>
    %147 = vector.multi_reduction <add>, %146, %cst_82 [1] : vector<8x288xf32> to vector<8xf32>
    %148 = vector.shape_cast %147 : vector<8xf32> to vector<8x1xf32>
    %c1_83 = arith.constant 1 : index
    %c0_84 = arith.constant 0 : index
    %c0_85 = arith.constant 0 : index
    %149 = vector.load %arg14[%c1_83, %c0_84, %c0_85] : memref<2x8x288xf32, #tpu.memory_space<vmem>>, vector<1x8x288xf32>
    %150 = vector.shape_cast %149 : vector<1x8x288xf32> to vector<8x288xf32>
    %151 = vector.broadcast %111 : vector<8x1xf32> to vector<8x288xf32>
    %152 = arith.mulf %150, %151 : vector<8x288xf32>
    %153 = vector.broadcast %113 : vector<8x1xf32> to vector<8x288xf32>
    %154 = arith.addf %152, %153 : vector<8x288xf32>
    %cst_86 = arith.constant 0.000000e+00 : f32
    %155 = vector.broadcast %cst_86 : f32 to vector<8x288xf32>
    %156 = arith.maximumf %154, %155 : vector<8x288xf32>
    %157 = vector.broadcast %1 : vector<1x288xf32> to vector<8x288xf32>
    %158 = arith.mulf %156, %157 : vector<8x288xf32>
    %c0_87 = arith.constant 0 : index
    %c128_88 = arith.constant 128 : index
    %159 = vector.load %arg17[%c0_87, %c128_88] : memref<8x454xf32, #tpu.memory_space<vmem>>, vector<8x288xf32>
    tpu.vector_store %arg17[%c0_87, %c128_88], %158 {strides = array<i32>} : memref<8x454xf32, #tpu.memory_space<vmem>>, vector<8x288xf32>,
    %c0_89 = arith.constant 0 : index
    %c109_90 = arith.constant 109 : index
    %160 = vector.load %arg17[%c0_89, %c109_90] : memref<8x454xf32, #tpu.memory_space<vmem>>, vector<8x288xf32>
    %c0_91 = arith.constant 0 : index
    %c110_92 = arith.constant 110 : index
    %161 = vector.load %arg17[%c0_91, %c110_92] : memref<8x454xf32, #tpu.memory_space<vmem>>, vector<8x288xf32>
    %c0_93 = arith.constant 0 : index
    %c111_94 = arith.constant 111 : index
    %162 = vector.load %arg17[%c0_93, %c111_94] : memref<8x454xf32, #tpu.memory_space<vmem>>, vector<8x288xf32>
    %c0_95 = arith.constant 0 : index
    %c127_96 = arith.constant 127 : index
    %163 = vector.load %arg17[%c0_95, %c127_96] : memref<8x454xf32, #tpu.memory_space<vmem>>, vector<8x288xf32>
    %c0_97 = arith.constant 0 : index
    %c128_98 = arith.constant 128 : index
    %164 = vector.load %arg17[%c0_97, %c128_98] : memref<8x454xf32, #tpu.memory_space<vmem>>, vector<8x288xf32>
    %c0_99 = arith.constant 0 : index
    %c129_100 = arith.constant 129 : index
    %165 = vector.load %arg17[%c0_99, %c129_100] : memref<8x454xf32, #tpu.memory_space<vmem>>, vector<8x288xf32>
    %c0_101 = arith.constant 0 : index
    %c145_102 = arith.constant 145 : index
    %166 = vector.load %arg17[%c0_101, %c145_102] : memref<8x454xf32, #tpu.memory_space<vmem>>, vector<8x288xf32>
    %c0_103 = arith.constant 0 : index
    %c146_104 = arith.constant 146 : index
    %167 = vector.load %arg17[%c0_103, %c146_104] : memref<8x454xf32, #tpu.memory_space<vmem>>, vector<8x288xf32>
    %c0_105 = arith.constant 0 : index
    %c147_106 = arith.constant 147 : index
    %168 = vector.load %arg17[%c0_105, %c147_106] : memref<8x454xf32, #tpu.memory_space<vmem>>, vector<8x288xf32>
    %169 = tpu.concatenate %160, %161, %162, %163, %164, %165, %166, %167, %168 in 0 : vector<8x288xf32>, vector<8x288xf32>, vector<8x288xf32>, vector<8x288xf32>, vector<8x288xf32>, vector<8x288xf32>, vector<8x288xf32>, vector<8x288xf32>, vector<8x288xf32> -> vector<72x288xf32>
    %170 = arith.truncf %169 : vector<72x288xf32> to vector<72x288xbf16>
    %cst_107 = arith.constant dense<0.000000e+00> : vector<8x288xf32>
    %171 = tpu.matmul %3, %170, %cst_107 {dimension_numbers = #tpu.dot_dimension_numbers<[1], [0], [0], [1], [0, 0, 1, 1], [], []>} : vector<8x72xbf16>, vector<72x288xbf16>, vector<8x288xf32> -> vector<8x288xf32>
    %172 = vector.broadcast %1 : vector<1x288xf32> to vector<8x288xf32>
    %173 = arith.mulf %171, %172 : vector<8x288xf32>
    %c1_108 = arith.constant 1 : index
    %c0_109 = arith.constant 0 : index
    %c0_110 = arith.constant 0 : index
    %174 = vector.load %arg16[%c1_108, %c0_109, %c0_110] : memref<2x8x288xf32, #tpu.memory_space<vmem>>, vector<1x8x288xf32>
    %175 = vector.shape_cast %174 : vector<1x8x288xf32> to vector<8x288xf32>
    %176 = vector.shape_cast %173 : vector<8x288xf32> to vector<1x8x288xf32>
    tpu.vector_store %arg16[%c1_108, %c0_109, %c0_110], %176 {strides = array<i32>} : memref<2x8x288xf32, #tpu.memory_space<vmem>>, vector<1x8x288xf32>,
    %cst_111 = arith.constant dense<0.000000e+00> : vector<8xf32>
    %177 = vector.multi_reduction <add>, %173, %cst_111 [1] : vector<8x288xf32> to vector<8xf32>
    %178 = vector.shape_cast %177 : vector<8xf32> to vector<8x1xf32>
    %179 = arith.mulf %173, %173 : vector<8x288xf32>
    %cst_112 = arith.constant dense<0.000000e+00> : vector<8xf32>
    %180 = vector.multi_reduction <add>, %179, %cst_112 [1] : vector<8x288xf32> to vector<8xf32>
    %181 = vector.shape_cast %180 : vector<8xf32> to vector<8x1xf32>
    %182 = arith.addf %145, %178 : vector<8x1xf32>
    %183 = arith.addf %148, %181 : vector<8x1xf32>
    %c0_113 = arith.constant 0 : index
    %c2 = arith.constant 2 : index
    %184 = vector.load %arg9[%c0_113, %c2] : memref<8x4xf32, #tpu.memory_space<vmem>>, vector<8x1xf32>
    %c0_114 = arith.constant 0 : index
    %c3 = arith.constant 3 : index
    %185 = vector.load %arg9[%c0_114, %c3] : memref<8x4xf32, #tpu.memory_space<vmem>>, vector<8x1xf32>
    %cst_115 = arith.constant 0.001953125 : f32
    %186 = vector.broadcast %cst_115 : f32 to vector<8x1xf32>
    %187 = arith.mulf %182, %186 : vector<8x1xf32>
    %cst_116 = arith.constant 0.001953125 : f32
    %188 = vector.broadcast %cst_116 : f32 to vector<8x1xf32>
    %189 = arith.mulf %183, %188 : vector<8x1xf32>
    %190 = arith.mulf %187, %187 : vector<8x1xf32>
    %191 = arith.subf %189, %190 : vector<8x1xf32>
    %cst_117 = arith.constant 0.000000e+00 : f32
    %192 = vector.broadcast %cst_117 : f32 to vector<8x1xf32>
    %193 = arith.maximumf %191, %192 : vector<8x1xf32>
    %cst_118 = arith.constant 9.99999974E-6 : f32
    %194 = vector.broadcast %cst_118 : f32 to vector<8x1xf32>
    %195 = arith.addf %193, %194 : vector<8x1xf32>
    %196 = math.rsqrt %195 : vector<8x1xf32>
    %197 = arith.mulf %184, %196 : vector<8x1xf32>
    %198 = arith.mulf %187, %197 : vector<8x1xf32>
    %199 = arith.subf %185, %198 : vector<8x1xf32>
    %c0_119 = arith.constant 0 : index
    %c0_120 = arith.constant 0 : index
    %200 = vector.load %arg12[%c0_119, %c0_120] : memref<269x64xf32, #tpu.memory_space<vmem>>, vector<269x64xf32>
    %c0_121 = arith.constant 0 : index
    %c0_122 = arith.constant 0 : index
    %c0_123 = arith.constant 0 : index
    %201 = vector.load %arg16[%c0_121, %c0_122, %c0_123] : memref<2x8x288xf32, #tpu.memory_space<vmem>>, vector<1x8x288xf32>
    %202 = vector.shape_cast %201 : vector<1x8x288xf32> to vector<8x288xf32>
    %203 = vector.broadcast %197 : vector<8x1xf32> to vector<8x288xf32>
    %204 = arith.mulf %202, %203 : vector<8x288xf32>
    %205 = vector.broadcast %199 : vector<8x1xf32> to vector<8x288xf32>
    %206 = arith.addf %204, %205 : vector<8x288xf32>
    %cst_124 = arith.constant 0.000000e+00 : f32
    %207 = vector.broadcast %cst_124 : f32 to vector<8x288xf32>
    %208 = arith.maximumf %206, %207 : vector<8x288xf32>
    %c0_125 = arith.constant 0 : index
    %c0_126 = arith.constant 0 : index
    %c0_127 = arith.constant 0 : index
    %209 = vector.load %arg15[%c0_125, %c0_126, %c0_127] : memref<2x8x288xf32, #tpu.memory_space<vmem>>, vector<1x8x288xf32>
    %210 = vector.shape_cast %209 : vector<1x8x288xf32> to vector<8x288xf32>
    %211 = arith.addf %208, %210 : vector<8x288xf32>
    %212 = vector.extract_strided_slice %211 {offsets = [0, 0], sizes = [8, 269], strides = [1, 1]} : vector<8x288xf32> to vector<8x269xf32>
    %213 = vector.extract_strided_slice %211 {offsets = [0, 1], sizes = [8, 269], strides = [1, 1]} : vector<8x288xf32> to vector<8x269xf32>
    %214 = arith.maximumf %212, %213 : vector<8x269xf32>
    %215 = vector.extract_strided_slice %211 {offsets = [0, 18], sizes = [8, 269], strides = [1, 1]} : vector<8x288xf32> to vector<8x269xf32>
    %216 = vector.extract_strided_slice %211 {offsets = [0, 19], sizes = [8, 269], strides = [1, 1]} : vector<8x288xf32> to vector<8x269xf32>
    %217 = arith.maximumf %215, %216 : vector<8x269xf32>
    %218 = arith.maximumf %214, %217 : vector<8x269xf32>
    %cst_128 = arith.constant dense<0.000000e+00> : vector<8x64xf32>
    %219 = tpu.matmul %218, %200, %cst_128 {dimension_numbers = #tpu.dot_dimension_numbers<[1], [0], [0], [1], [0, 0, 1, 1], [], []>} : vector<8x269xf32>, vector<269x64xf32>, vector<8x64xf32> -> vector<8x64xf32>
    %c0_129 = arith.constant 0 : index
    %c0_130 = arith.constant 0 : index
    %c0_131 = arith.constant 0 : index
    %220 = vector.load %arg13[%c0_129, %c0_130, %c0_131] : memref<2x8x64xf32, #tpu.memory_space<vmem>>, vector<1x8x64xf32>
    %221 = vector.shape_cast %220 : vector<1x8x64xf32> to vector<8x64xf32>
    %222 = vector.shape_cast %219 : vector<8x64xf32> to vector<1x8x64xf32>
    tpu.vector_store %arg13[%c0_129, %c0_130, %c0_131], %222 {strides = array<i32>} : memref<2x8x64xf32, #tpu.memory_space<vmem>>, vector<1x8x64xf32>,
    %c1_132 = arith.constant 1 : index
    %c0_133 = arith.constant 0 : index
    %c0_134 = arith.constant 0 : index
    %223 = vector.load %arg16[%c1_132, %c0_133, %c0_134] : memref<2x8x288xf32, #tpu.memory_space<vmem>>, vector<1x8x288xf32>
    %224 = vector.shape_cast %223 : vector<1x8x288xf32> to vector<8x288xf32>
    %225 = vector.broadcast %197 : vector<8x1xf32> to vector<8x288xf32>
    %226 = arith.mulf %224, %225 : vector<8x288xf32>
    %227 = vector.broadcast %199 : vector<8x1xf32> to vector<8x288xf32>
    %228 = arith.addf %226, %227 : vector<8x288xf32>
    %cst_135 = arith.constant 0.000000e+00 : f32
    %229 = vector.broadcast %cst_135 : f32 to vector<8x288xf32>
    %230 = arith.maximumf %228, %229 : vector<8x288xf32>
    %c1_136 = arith.constant 1 : index
    %c0_137 = arith.constant 0 : index
    %c0_138 = arith.constant 0 : index
    %231 = vector.load %arg15[%c1_136, %c0_137, %c0_138] : memref<2x8x288xf32, #tpu.memory_space<vmem>>, vector<1x8x288xf32>
    %232 = vector.shape_cast %231 : vector<1x8x288xf32> to vector<8x288xf32>
    %233 = arith.addf %230, %232 : vector<8x288xf32>
    %234 = vector.extract_strided_slice %233 {offsets = [0, 0], sizes = [8, 269], strides = [1, 1]} : vector<8x288xf32> to vector<8x269xf32>
    %235 = vector.extract_strided_slice %233 {offsets = [0, 1], sizes = [8, 269], strides = [1, 1]} : vector<8x288xf32> to vector<8x269xf32>
    %236 = arith.maximumf %234, %235 : vector<8x269xf32>
    %237 = vector.extract_strided_slice %233 {offsets = [0, 18], sizes = [8, 269], strides = [1, 1]} : vector<8x288xf32> to vector<8x269xf32>
    %238 = vector.extract_strided_slice %233 {offsets = [0, 19], sizes = [8, 269], strides = [1, 1]} : vector<8x288xf32> to vector<8x269xf32>
    %239 = arith.maximumf %237, %238 : vector<8x269xf32>
    %240 = arith.maximumf %236, %239 : vector<8x269xf32>
    %cst_139 = arith.constant dense<0.000000e+00> : vector<8x64xf32>
    %241 = tpu.matmul %240, %200, %cst_139 {dimension_numbers = #tpu.dot_dimension_numbers<[1], [0], [0], [1], [0, 0, 1, 1], [], []>} : vector<8x269xf32>, vector<269x64xf32>, vector<8x64xf32> -> vector<8x64xf32>
    %c1_140 = arith.constant 1 : index
    %c0_141 = arith.constant 0 : index
    %c0_142 = arith.constant 0 : index
    %242 = vector.load %arg13[%c1_140, %c0_141, %c0_142] : memref<2x8x64xf32, #tpu.memory_space<vmem>>, vector<1x8x64xf32>
    %243 = vector.shape_cast %242 : vector<1x8x64xf32> to vector<8x64xf32>
    %244 = vector.shape_cast %241 : vector<8x64xf32> to vector<1x8x64xf32>
    tpu.vector_store %arg13[%c1_140, %c0_141, %c0_142], %244 {strides = array<i32>} : memref<2x8x64xf32, #tpu.memory_space<vmem>>, vector<1x8x64xf32>,
    return
  }
  func.func @transform_0(%arg0: i32) -> (i32, i32, i32) {
    %c0_i32 = arith.constant 0 : i32
    %c0_i32_0 = arith.constant 0 : i32
    %c0_i32_1 = arith.constant 0 : i32
    %c0_i32_2 = arith.constant 0 : i32
    return %c0_i32, %c0_i32_0, %c0_i32_1 : i32, i32, i32
  }
  func.func @transform_1(%arg0: i32) -> (i32, i32, i32) {
    %c0_i32 = arith.constant 0 : i32
    %c0_i32_0 = arith.constant 0 : i32
    %c0_i32_1 = arith.constant 0 : i32
    %c0_i32_2 = arith.constant 0 : i32
    return %c0_i32, %c0_i32_0, %c0_i32_1 : i32, i32, i32
  }
  func.func @transform_2(%arg0: i32) -> (i32, i32) {
    %c0_i32 = arith.constant 0 : i32
    %c0_i32_0 = arith.constant 0 : i32
    %c0_i32_1 = arith.constant 0 : i32
    return %c0_i32, %c0_i32_0 : i32, i32
  }
  func.func @transform_3(%arg0: i32) -> (i32, i32) {
    %c0_i32 = arith.constant 0 : i32
    %c0_i32_0 = arith.constant 0 : i32
    %c0_i32_1 = arith.constant 0 : i32
    return %c0_i32, %c0_i32_0 : i32, i32
  }
  func.func @transform_4(%arg0: i32) -> (i32, i32) {
    %c0_i32 = arith.constant 0 : i32
    %c0_i32_0 = arith.constant 0 : i32
    %c0_i32_1 = arith.constant 0 : i32
    return %c0_i32, %c0_i32_0 : i32, i32
  }
  func.func @transform_5(%arg0: i32) -> (i32, i32) {
    %c0_i32 = arith.constant 0 : i32
    %c0_i32_0 = arith.constant 0 : i32
    %c0_i32_1 = arith.constant 0 : i32
    return %c0_i32, %c0_i32_0 : i32, i32
  }
  func.func @transform_6(%arg0: i32) -> (i32, i32) {
    %c0_i32 = arith.constant 0 : i32
    %c0_i32_0 = arith.constant 0 : i32
    %c0_i32_1 = arith.constant 0 : i32
    return %c0_i32, %c0_i32_0 : i32, i32
  }
  func.func @transform_7(%arg0: i32) -> (i32, i32) {
    %c0_i32 = arith.constant 0 : i32
    %c0_i32_0 = arith.constant 0 : i32
    %c0_i32_1 = arith.constant 0 : i32
    return %c0_i32, %c0_i32_0 : i32, i32
  }
  func.func @transform_8(%arg0: i32) -> (i32, i32) {
    %c0_i32 = arith.constant 0 : i32
    %c0_i32_0 = arith.constant 0 : i32
    %c0_i32_1 = arith.constant 0 : i32
    return %c0_i32, %c0_i32_0 : i32, i32
  }
  func.func @transform_9(%arg0: i32) -> (i32, i32) {
    %c0_i32 = arith.constant 0 : i32
    %c0_i32_0 = arith.constant 0 : i32
    %c0_i32_1 = arith.constant 0 : i32
    return %c0_i32, %c0_i32_0 : i32, i32
  }
  func.func @transform_10(%arg0: i32) -> (i32, i32) {
    %c0_i32 = arith.constant 0 : i32
    %c0_i32_0 = arith.constant 0 : i32
    %c0_i32_1 = arith.constant 0 : i32
    return %c0_i32, %c0_i32_0 : i32, i32
  }
  func.func @transform_11(%arg0: i32) -> (i32, i32) {
    %c0_i32 = arith.constant 0 : i32
    %c0_i32_0 = arith.constant 0 : i32
    %c0_i32_1 = arith.constant 0 : i32
    return %c0_i32, %c0_i32_0 : i32, i32
  }
  func.func @transform_12(%arg0: i32) -> (i32, i32, i32) {
    %c0_i32 = arith.constant 0 : i32
    %c0_i32_0 = arith.constant 0 : i32
    %c0_i32_1 = arith.constant 0 : i32
    %c0_i32_2 = arith.constant 0 : i32
    return %c0_i32, %c0_i32_0, %c0_i32_1 : i32, i32, i32
  }
}

</mosaic_0001>

<bundles_post_ra>
// kernel: tpu_custom_call.1
= control target key start
LH: loop header
LB: loop body
LE: loop exit
PB: predicated region body
PF: predicated region fallthrough
CT: control target
= control target key end

     0   :  { %vm57_vm0 = vcmask 130048   ;;  %s3601_s0 = inlined_call_operand.vmem [shape: f32[2,8,342], index: 0, kind: input, shape index: {}]   ;;  %s3602_s1 = inlined_call_operand.vmem [shape: f32[2,1,16], index: 1, kind: input, shape index: {}]   ;;  %s3603_s2 = inlined_call_operand.vmem [shape: f32[8,16], index: 2, kind: input, shape index: {}]   ;;  %s3604_s3 = inlined_call_operand.vmem [shape: f32[8,1], index: 3, kind: input, shape index: {}]   ;;  %s3605_s4 = inlined_call_operand.vmem [shape: bf16[8,72], index: 4, kind: input, shape index: {}]   ;;  %s3606_s5 = inlined_call_operand.vmem [shape: bf16[8,72], index: 5, kind: input, shape index: {}]   ;;  %s3607_s6 = inlined_call_operand.vmem [shape: bf16[8,8], index: 6, kind: input, shape index: {}]   ;;  %s3608_s7 = inlined_call_operand.vmem [shape: f32[8,1], index: 7, kind: input, shape index: {}]   ;;  %s3609_s8 = inlined_call_operand.vmem [shape: f32[8,4], index: 8, kind: input, shape index: {}]   ;;  %s3610_s9 = inlined_call_operand.vmem [shape: f32[1,342], index: 9, kind: input, shape index: {}]   ;;  %s3611_s10 = inlined_call_operand.vmem [shape: f32[1,288], index: 10, kind: input, shape index: {}]   ;;  %s3612_s11 = inlined_call_operand.vmem [shape: f32[269,64], index: 11, kind: input, shape index: {}]   ;;  %s3613_s12 = inlined_call_operand.hbm [shape: f32[2,8,64], index: 12, kind: output, shape index: {}]  }
   0x1   :  { %v47_v0 = vld [vmem:[%s3603_s2] sm:$0xff] }
   0x2   :  { %v2025_v1 = vld [vmem:[%s3602_s1] ss:$0 sm:$0xff]  ;;  %v2033_v2 = vld [vmem:[%s3602_s1 + $0x1] ss:$0 sm:$0xff] }
   0x3   :  { %v56_v3 = vmul.f32 %v2025_v1, %v47_v0  ;;  %v464_v4 = vmul.f32 %v2033_v2, %v47_v0 }
   0x4   :  { %17 = vsyncpa [#allocation7], 0  ;;  %v2536_v7 = vmov 0   ;;  %v48_v8 = vld [vmem:[%s3604_s3] sm:$0xff]  ;;  %v71_v13 = vlaneseq  ;;  %v63_v23 = vld [vmem:[%s3601_s0 + $0x8] sm:$0xff]  ;;  %v2537_v31 = vmov 0.0  }
   0x5   :  { %v58_v5 = vsel %vm57_vm0, %v56_v3, 0.0  ;;  %v465_v6 = vsel %vm57_vm0, %v464_v4, 0.0  ;;  %2258 = vset.pattern.permute.xlu1 %v2536_v7  ;;  %252 = vmatprep.mubr.bf16.mxu0 %v2536_v7  ;;  %v43_v18 = vld [vmem:[%s3610_s9] sm:$0x7]  ;;  %v64_v28 = vld [vmem:[%s3601_s0 + $0x10] sm:$0xff]  ;;  %835 = vst [vmem:[#allocation5] sm:$0xff] %v2537_v31 }
   0x6   :  { %59 = vadd.xlane.f32.xlu0 %v58_v5  ;;  %v2635_v14 = vshrl.u32 %v71_v13, 7  ;;  %v62_v22 = vld [vmem:[%s3601_s0] sm:$0xff]  ;;  %2157 = vmatprep.subr.bf16.mxu1 %v2537_v31  ;;  %v2034_v32 = vld [vmem:[%s3601_s0 + $0x18] sm:$0xff]  ;;  %s2538_s17 = smov 90   ;;  %s2539_s18 = smov 108   ;;  %v2036_v45 = vld [vmem:[%s3601_s0 + $0x28] sm:$0xff] }
   0x7   :  { %2349 = vset.pattern.permute.xlu0 %v2536_v7  ;;  %v2035_v41 = vld [vmem:[%s3601_s0 + $0x20] sm:$0xff]  ;;  %s2540_s21 = smov 92   ;;  %s2541_s22 = smov 91   ;;  %vm2546_vm1 = vmmov 0   ;;  %vm185_vm2 = vcmask 736256   ;;  %vm210_vm3 = vcmask 1043456  }
   0x8   :  { %v73_v15 = vsub.s32 0, %v2635_v14  ;;  %v77_v16 = vsub.s32 1, %v2635_v14  ;;  %v81_v17 = vsub.s32 2, %v2635_v14  ;;  %s2542_s23 = smov 110   ;;  %s2543_s26 = smov 127   ;;  %2167 = vmatprep.mubr.msk.bf16.mxu1 %vm2546_vm1, %v2537_v31  ;;  %vm161_vm4 = vcmask 752640  }
   0x9   :  { %s2544_s2 = smov 109   ;;  %s2545_s0 = smov 126   ;;  %vm173_vm5 = vcmask 744448   ;;  %vm149_vm6 = vcmask 883712   ;;  %vm137_vm7 = vcmask 891904   ;;  %vm125_vm8 = vcmask 900096  }
   0xa   :  { %466 = vadd.xlane.f32.xlu0 %v465_v6  ;;  %v74_v19 = vrot.slane %v43_v18, %v73_v15  ;;  %v78_v20 = vrot.slane %v43_v18, %v77_v16  ;;  %v82_v21 = vrot.slane %v43_v18, %v81_v17  ;;  %vm113_vm9 = vcmask 1031168   ;;  %s2548_s13 = smov 1   ;;  %s2549_s9 = smov 19  }
   0xb   :  { %vm101_vm10 = vcmask 1039360   ;;  %vm206_vm11 = vcmask 588800   ;;  %vm346_vm12 = vcmask 64512   ;;  %vm322_vm13 = vcmask 261120  }
   0xc   :  { %vm838_vm14 = vcmask 572416   ;;  %vm1061_vm15 = vcmask 154624   ;;  %vm1666_vm0 = vcmask 1044480  }
   0xd   :  { %839 = vst.msk [vmem:[#allocation5 + $0x18] sm:$0xff] %vm838_vm14, %v2537_v31 }
  0x8f   :  { %v60_v9 = vpop.xlane.xlu0 %59 }
  0x90   :  { %v61_v10 = vadd.f32 %v60_v9, %v48_v8 }
  0x92   :  { %67 = vperm.xlu1 %2258, %v61_v10  }
  0x93   :  { %v467_v11 = vpop.xlane.xlu0 %466 }
  0x94   :  { %v468_v12 = vadd.f32 %v467_v11, %v48_v8 }
  0x96   :  { %475 = vperm.xlu1 %2258, %v468_v12  }
 0x10d   :  { %v68_v24 = vpop.permute.xlu1 %67 }
 0x10e   :  { %v86_v25 = vmul.f32 %v74_v19, %v68_v24  ;;  %v87_v26 = vmul.f32 %v78_v20, %v68_v24  ;;  %v88_v27 = vmul.f32 %v82_v21, %v68_v24 }
 0x110   :  { %v2658_v29 = vadd.f32 %v86_v25, %v62_v22  ;;  %v2660_v30 = vadd.f32 %v87_v26, %v63_v23  ;;  %v2667_v34 = vadd.f32 %v88_v27, %v64_v28 }
 0x111   :  { %v476_v33 = vpop.permute.xlu1 %475 }
 0x112   :  { %v478_v35 = vmul.f32 %v476_v33, %v74_v19  ;;  %v2259_v36 = vpack.i.bf16 %v2660_v30, %v2658_v29  ;;  %v2289_v39 = vpack.i.bf16 %v2667_v34, %v2660_v30  ;;  %v479_v40 = vmul.f32 %v476_v33, %v78_v20 }
 0x113   :  { %v480_v43 = vmul.f32 %v476_v33, %v82_v21  ;;  %v325_v48 = vpack.c.bf16 %v2660_v30, %v2660_v30  ;;  %v324_v50 = vpack.c.bf16 %v2658_v29, %v2658_v29  ;;  %v326_v51 = vpack.c.bf16 %v2667_v34, %v2667_v34 }
 0x114   :  { %v2671_v37 = vadd.f32 %v2034_v32, %v478_v35  ;;  %2260 = vrot.lane.b32.xlu0 %v2259_v36, %s2538_s17  ;;  %v2686_v42 = vadd.f32 %v2035_v41, %v479_v40 }
 0x115   :  { %v2698_v46 = vadd.f32 %v2036_v45, %v480_v43 }
 0x116   :  { %v2264_v38 = vpack.i.bf16 %v2671_v37, %v2667_v34  ;;  %v2279_v44 = vpack.i.bf16 %v2686_v42, %v2658_v29 }
 0x117   :  { %v2309_v47 = vpack.i.bf16 %v2698_v46, %v2686_v42  ;;  %v2314_v49 = vpack.i.bf16 %v2671_v37, %v2698_v46 }
 0x118   :  { %2265 = vrot.lane.b32.xlu1 %v2264_v38, %s2538_s17  ;;  %2290 = vrot.lane.b32.xlu0 %v2289_v39, %s2539_s18 }
 0x11c   :  { %2270 = vrot.lane.b32.xlu1 %v2289_v39, %s2540_s21  ;;  %143 = vrot.lane.b32.xlu0 %v2658_v29, %s2539_s18 }
 0x120   :  { %2275 = vrot.lane.b32.xlu1 %v2289_v39, %s2541_s22  ;;  %2300 = vrot.lane.b32.xlu0 %v2289_v39, %s2542_s23 }
 0x124   :  { %2280 = vrot.lane.b32.xlu1 %v2279_v44, %s2540_s21  ;;  %119 = vrot.lane.b32.xlu0 %v2658_v29, %s2542_s23 }
 0x128   :  { %167 = vrot.lane.b32.xlu1 %v2658_v29, %s2541_s22  ;;  %95 = vrot.lane.b32.xlu0 %v2658_v29, %s2543_s26 }
 0x12c   :  { %2285 = vrot.lane.b32.xlu1 %v2289_v39, %s2544_s2  ;;  %2310 = vrot.lane.b32.xlu0 %v2309_v47, %s2538_s17 }
 0x130   :  { %131 = vrot.lane.b32.xlu1 %v2658_v29, %s2544_s2  ;;  %2320 = vrot.lane.b32.xlu0 %v2309_v47, %s2541_s22 }
 0x134   :  { %2295 = vrot.lane.b32.xlu1 %v2289_v39, %s2545_s0  ;;  %339 = vrot.lane.b32.xlu0 %v325_v48, %s2544_s2 }
 0x138   :  { %107 = vrot.lane.b32.xlu1 %v2658_v29, %s2545_s0  ;;  %2325 = vrot.lane.b32.xlu0 %v2309_v47, %s2544_s2 }
 0x13c   :  { %2305 = vrot.lane.b32.xlu1 %v2289_v39, %s2543_s26  ;;  %520 = vrot.lane.b32.xlu0 %v2671_v37, %s2544_s2 }
 0x140   :  { %2315 = vrot.lane.b32.xlu1 %v2314_v49, %s2540_s21  ;;  %2335 = vrot.lane.b32.xlu0 %v2309_v47, %s2545_s0 }
 0x144   :  { %553 = vrot.lane.b32.xlu1 %v2671_v37, %s2541_s22  ;;  %498 = vrot.lane.b32.xlu0 %v2671_v37, %s2545_s0 }
 0x148   :  { %2345 = vrot.lane.b32.xlu0 %v2309_v47, %s2543_s26  ;;  %337 = vrot.lane.b32.xlu1 %v324_v50, %s2544_s2 }
 0x14c   :  { %341 = vrot.lane.b32.xlu1 %v326_v51, %s2544_s2 }
 0x150   :  { %2330 = vrot.lane.b32.xlu1 %v2309_v47, %s2539_s18 }
 0x154   :  { %531 = vrot.lane.b32.xlu1 %v2671_v37, %s2539_s18 }
 0x158   :  { %2340 = vrot.lane.b32.xlu1 %v2309_v47, %s2542_s23 }
 0x15c   :  { %509 = vrot.lane.b32.xlu1 %v2671_v37, %s2542_s23 }
 0x160   :  { %487 = vrot.lane.b32.xlu1 %v2671_v37, %s2543_s26 }
 0x186   :  { %v2261_v52 = vpop.permute.xlu0 %2260 }
 0x187   :  { %v2263_v53 = vunpack.i.h.bf16 %v2261_v52  ;;  %v2262_v54 = vunpack.i.l.bf16 %v2261_v52 }
 0x189   :  { %v186_v55 = vsel %vm185_vm2, %v2262_v54, %v2263_v53 }
 0x18a   :  { %v2747_v56 = vpop.permute.xlu1 %2265  ;;  %v2291_v57 = vpop.permute.xlu0 %2290  ;;  %v203_v59 = vpack.c.bf16 %v186_v55, %v186_v55 }
 0x18b   :  { %v2267_v58 = vunpack.i.l.bf16 %v2747_v56  ;;  %v2293_v26 = vunpack.i.h.bf16 %v2291_v57  ;;  %v2292_v27 = vunpack.i.l.bf16 %v2291_v57 }
 0x18c   :  { %v212_v2 = vsel %vm210_vm3, %v203_v59, 0 }
 0x18d   :  { %v187_v60 = vsel %vm185_vm2, %v2263_v53, %v2267_v58  ;;  %v205_v61 = vpack.c.bf16 %v2267_v58, %v2267_v58  ;;  %v151_v39 = vsel %vm149_vm6, %v2292_v27, %v2293_v26 }
 0x18e   :  { %v2271_v62 = vpop.permute.xlu1 %2270  ;;  %v144_v63 = vpop.permute.xlu0 %143  ;;  %v204_v0 = vpack.c.bf16 %v187_v60, %v187_v60 }
 0x18f   :  { %v218_v1 = vsel %vm210_vm3, %v205_v61, 0  ;;  %v2273_v3 = vunpack.i.h.bf16 %v2271_v62  ;;  %v2272_v4 = vunpack.i.l.bf16 %v2271_v62  ;;  %v150_v43 = vsel %vm149_vm6, %v144_v63, %v2292_v27 }
 0x190   :  { %2026 = vmatprep.subr.msk.bf16.mxu0 %vm210_vm3, %v204_v0  ;;  %2158 = vmatpush3.bf16.msra.mxu1 %v218_v1 }
 0x191   :  { %227 = vmatpush1.bf16.msra.mxu0 %v212_v2  ;;  %2159 = vmatprep.subr.bf16.mxu1 %v2537_v31  ;;  %v163_v11 = vsel %vm161_vm4, %v2272_v4, %v2273_v3 }
 0x192   :  { %v2276_v5 = vpop.permute.xlu1 %2275  ;;  %v2301_v6 = vpop.permute.xlu0 %2300 }
 0x193   :  { %v2278_v8 = vunpack.i.h.bf16 %v2276_v5  ;;  %v2277_v9 = vunpack.i.l.bf16 %v2276_v5  ;;  %v2303_v48 = vunpack.i.h.bf16 %v2301_v6  ;;  %v2302_v49 = vunpack.i.l.bf16 %v2301_v6 }
 0x195   :  { %v202_v10 = vpack.c.bf16 %v2278_v8, %v2273_v3  ;;  %v175_v12 = vsel %vm173_vm5, %v2277_v9, %v2278_v8  ;;  %v127_v57 = vsel %vm125_vm8, %v2302_v49, %v2303_v48 }
 0x196   :  { %v2757_v13 = vpop.permute.xlu1 %2280  ;;  %v120_v18 = vpop.permute.xlu0 %119  ;;  %v201_v19 = vpack.c.bf16 %v175_v12, %v163_v11 }
 0x197   :  { %v2282_v20 = vunpack.i.l.bf16 %v2757_v13  ;;  %2160 = vmatpush3.bf16.msra.mxu1 %v202_v10  ;;  %v126_v60 = vsel %vm125_vm8, %v120_v18, %v2302_v49  ;;  %v2268_v18 = vunpack.i.h.bf16 %v2747_v56 }
 0x198   :  { %228 = vmatprep.subr.bf16.mxu0 %v201_v19  ;;  %2161 = vmatprep.subr.bf16.mxu1 %v2537_v31 }
 0x199   :  { %v162_v23 = vsel %vm161_vm4, %v2282_v20, %v2272_v4 }
 0x19a   :  { %v168_v21 = vpop.permute.xlu1 %167  ;;  %v96_v22 = vpop.permute.xlu0 %95 }
 0x19b   :  { %v174_v24 = vsel %vm173_vm5, %v168_v21, %v2277_v9 }
 0x19c   :  { %v200_v25 = vpack.c.bf16 %v174_v24, %v162_v23 }
 0x19e   :  { %v2286_v28 = vpop.permute.xlu1 %2285  ;;  %v2763_v32 = vpop.permute.xlu0 %2310  ;;  %229 = vmatpush1.bf16.msra.mxu0 %v200_v25 }
 0x19f   :  { %v2288_v33 = vunpack.i.h.bf16 %v2286_v28  ;;  %v2287_v35 = vunpack.i.l.bf16 %v2286_v28  ;;  %v2283_v28 = vunpack.i.h.bf16 %v2757_v13 }
 0x1a1   :  { %v199_v36 = vpack.c.bf16 %v2293_v26, %v2288_v33  ;;  %v139_v38 = vsel %vm137_vm7, %v2287_v35, %v2288_v33 }
 0x1a2   :  { %v132_v40 = vpop.permute.xlu1 %131  ;;  %v198_v41 = vpack.c.bf16 %v151_v39, %v139_v38  ;;  %v2769_v45 = vpop.permute.xlu0 %2320 }
 0x1a3   :  { %v138_v44 = vsel %vm137_vm7, %v132_v40, %v2287_v35  ;;  %2162 = vmatpush3.bf16.msra.mxu1 %v199_v36  ;;  %v2323_v24 = vunpack.i.h.bf16 %v2769_v45  ;;  %v2322_v25 = vunpack.i.l.bf16 %v2769_v45  ;;  %v327_v36 = vld [vmem:[%s3607_s6] sm:$0xf] }
 0x1a4   :  { %v197_v47 = vpack.c.bf16 %v150_v43, %v138_v44  ;;  %230 = vmatprep.subr.bf16.mxu0 %v198_v41  ;;  %2163 = vmatprep.subr.bf16.mxu1 %v2537_v31 }
 0x1a5   :  { %v560_v44 = vsel %vm173_vm5, %v2322_v25, %v2323_v24 }
 0x1a6   :  { %v2296_v50 = vpop.permute.xlu1 %2295  ;;  %231 = vmatpush1.bf16.msra.mxu0 %v197_v47  ;;  %v340_v53 = vpop.permute.xlu0 %339 }
 0x1a7   :  { %v2298_v51 = vunpack.i.h.bf16 %v2296_v50  ;;  %v2297_v52 = vunpack.i.l.bf16 %v2296_v50 }
 0x1a9   :  { %v196_v54 = vpack.c.bf16 %v2303_v48, %v2298_v51  ;;  %v115_v55 = vsel %vm113_vm9, %v2297_v52, %v2298_v51 }
 0x1aa   :  { %v108_v58 = vpop.permute.xlu1 %107  ;;  %v195_v59 = vpack.c.bf16 %v127_v57, %v115_v55  ;;  %v2777_v0 = vpop.permute.xlu0 %2325 }
 0x1ab   :  { %v114_v61 = vsel %vm113_vm9, %v108_v58, %v2297_v52  ;;  %2164 = vmatpush3.bf16.msra.mxu1 %v196_v54  ;;  %v2328_v45 = vunpack.i.h.bf16 %v2777_v0  ;;  %v2327_v47 = vunpack.i.l.bf16 %v2777_v0 }
 0x1ac   :  { %v194_v62 = vpack.c.bf16 %v126_v60, %v114_v61  ;;  %232 = vmatprep.subr.bf16.mxu0 %v195_v59  ;;  %2165 = vmatprep.subr.bf16.mxu1 %v2537_v31 }
 0x1ad   :  { %v527_v60 = vsel %vm137_vm7, %v2327_v47, %v2328_v45 }
 0x1ae   :  { %v2306_v63 = vpop.permute.xlu1 %2305  ;;  %233 = vmatpush1.bf16.msra.mxu0 %v194_v62  ;;  %v2787_v10 = vpop.permute.xlu0 %520 }
 0x1af   :  { %v2308_v1 = vunpack.i.h.bf16 %v2306_v63  ;;  %v2307_v2 = vunpack.i.l.bf16 %v2306_v63 }
 0x1b1   :  { %v193_v3 = vpack.c.bf16 %v2308_v1, %v2667_v34  ;;  %v103_v4 = vsel %vm101_vm10, %v2307_v2, %v2308_v1  ;;  %v102_v5 = vsel %vm101_vm10, %v96_v22, %v2307_v2  ;;  %v2792_v34 = vld [vmem:[%s3605_s4] sm:$0xf]  ;;  %v526_v1 = vsel %vm137_vm7, %v2787_v10, %v2327_v47 }
 0x1b2   :  { %v2782_v6 = vpop.permute.xlu1 %2315  ;;  %v192_v8 = vpack.c.bf16 %v103_v4, %v2660_v30  ;;  %v191_v9 = vpack.c.bf16 %v102_v5, %v2658_v29  ;;  %v2313_v29 = vunpack.i.h.bf16 %v2763_v32  ;;  %v2312_v30 = vunpack.i.l.bf16 %v2763_v32  ;;  %v2804_v19 = vpop.permute.xlu0 %2335 }
 0x1b3   :  { %2166 = vmatpush3.bf16.msra.mxu1 %v193_v3  ;;  %v2317_v20 = vunpack.i.l.bf16 %v2782_v6  ;;  %v2318_v40 = vunpack.i.h.bf16 %v2782_v6  ;;  %v2338_v63 = vunpack.i.h.bf16 %v2804_v19  ;;  %v2337_v0 = vunpack.i.l.bf16 %v2804_v19 }
 0x1b4   :  { %234 = vmatprep.subr.bf16.mxu0 %v192_v8  ;;  %2171 = vmatprep.subr.bf16.mxu1 %v2537_v31  ;;  %v571_v22 = vsel %vm185_vm2, %v2312_v30, %v2313_v29  ;;  %v570_v23 = vsel %vm185_vm2, %v2268_v18, %v2312_v30  ;;  %v589_v27 = vpack.c.bf16 %v2313_v29, %v2313_v29 }
 0x1b5   :  { %235 = vmatpush1.bf16.msra.mxu0 %v191_v9  ;;  %v588_v35 = vpack.c.bf16 %v571_v22, %v571_v22  ;;  %v587_v38 = vpack.c.bf16 %v570_v23, %v570_v23  ;;  %v549_v13 = vsel %vm161_vm4, %v2283_v28, %v2317_v20  ;;  %v586_v54 = vpack.c.bf16 %v2323_v24, %v2317_v20 }
 0x1b6   :  { %v554_v11 = vpop.permute.xlu1 %553  ;;  %2168 = vmatmul.mubr.msk.bf16.vlgmr.msra.gmra.mxu1 %vm206_vm11, %v2792_v34  ;;  %v499_v39 = vpop.permute.xlu0 %498  ;;  %v597_v43 = vsel %vm210_vm3, %v589_v27, 0  ;;  %v585_v52 = vpack.c.bf16 %v560_v44, %v549_v13  ;;  %v548_v55 = vsel %vm161_vm4, %v2318_v40, %v2283_v28  ;;  %v505_v29 = vsel %vm113_vm9, %v2337_v0, %v2338_v63  ;;  %v44_v27 = vld [vmem:[%s3611_s10] sm:$0x7] }
 0x1b7   :  { %2173 = vmatprep.mubr.msk.bf16.mxu1 %vm2546_vm1, %v2537_v31  ;;  %v559_v50 = vsel %vm173_vm5, %v554_v11, %v2322_v25  ;;  %v591_v51 = vsel %vm210_vm3, %v587_v38, 0  ;;  %v504_v19 = vsel %vm113_vm9, %v499_v39, %v2337_v0  ;;  %v2869_v28 = vrot.slane %v44_v27, %v81_v17 }
 0x1b8   :  { %2027 = vmatmul.mubr.msk.bf16.vlgmr.msra.gmra.mxu0 %vm206_vm11, %v2792_v34  ;;  %v584_v58 = vpack.c.bf16 %v559_v50, %v548_v55 }
 0x1b9   :  { %391 = vmatprep.mubr.bf16.mxu0 %v2536_v7 }
 0x1ba   :  { %v338_v12 = vpop.permute.xlu1 %337  ;;  %v2346_v59 = vpop.permute.xlu0 %2345 }
 0x1bb   :  { %v344_v21 = vsel %vm137_vm7, %v338_v12, %v340_v53  ;;  %v2348_v2 = vunpack.i.h.bf16 %v2346_v59  ;;  %v2347_v3 = vunpack.i.l.bf16 %v2346_v59 }
 0x1bc   :  { %v351_v33 = vsel %vm210_vm3, %v344_v21, 0 }
 0x1bd   :  { %v494_v10 = vsel %vm101_vm10, %v2347_v3, %v2348_v2  ;;  %v577_v23 = vpack.c.bf16 %v2348_v2, %v2698_v46 }
 0x1be   :  { %v342_v26 = vpop.permute.xlu1 %341  ;;  %v576_v22 = vpack.c.bf16 %v494_v10, %v2686_v42 }
 0x1bf   :  { %v345_v56 = vsel %vm137_vm7, %v340_v53, %v342_v26  ;;  %v357_v32 = vsel %vm210_vm3, %v342_v26, 0 }
 0x1c0   :  { %2029 = vmatprep.subr.msk.bf16.mxu0 %vm210_vm3, %v345_v56  ;;  %2172 = vmatpush3.bf16.msra.mxu1 %v357_v32  ;;  %v2873_v56 = vrot.slane %v44_v27, %v73_v15 }
 0x1c1   :  { %374 = vmatpush1.bf16.msra.mxu0 %v351_v33  ;;  %2177 = vmatprep.subr.bf16.mxu1 %v2537_v31  ;;  %v2877_v33 = vrot.slane %v44_v27, %v77_v16 }
 0x1c2   :  { %2037 = vmatprep.subr.msk.bf16.mxu0 %vm210_vm3, %v588_v35  ;;  %v2331_v41 = vpop.permute.xlu1 %2330 }
 0x1c3   :  { %v2333_v48 = vunpack.i.h.bf16 %v2331_v41  ;;  %v2332_v49 = vunpack.i.l.bf16 %v2331_v41  ;;  %2174 = vmatmul.mubr.msk.bf16.vlgmr.msra.gmra.mxu1 %vm346_vm12, %v327_v36 }
 0x1c4   :  { %2030 = vmatmul.mubr.msk.bf16.vlgmr.msra.gmra.mxu0 %vm346_vm12, %v327_v36  ;;  %2178 = vmatpush3.bf16.msra.mxu1 %v597_v43 }
 0x1c5   :  { %606 = vmatpush1.bf16.msra.mxu0 %v591_v51  ;;  %2179 = vmatprep.subr.bf16.mxu1 %v2537_v31  ;;  %v538_v53 = vsel %vm149_vm6, %v2332_v49, %v2333_v48  ;;  %v583_v4 = vpack.c.bf16 %v2333_v48, %v2328_v45 }
 0x1c6   :  { %607 = vmatprep.subr.bf16.mxu0 %v585_v52  ;;  %v532_v57 = vpop.permute.xlu1 %531  ;;  %631 = vmatprep.mubr.bf16.mxu0 %v2536_v7  ;;  %v582_v62 = vpack.c.bf16 %v538_v53, %v527_v60 }
 0x1c7   :  { %2187 = vmatprep.mubr.msk.bf16.mxu1 %vm2546_vm1, %v2537_v31  ;;  %v537_v61 = vsel %vm149_vm6, %v532_v57, %v2332_v49 }
 0x1c8   :  { %2180 = vmatpush3.bf16.msra.mxu1 %v586_v54  ;;  %v581_v6 = vpack.c.bf16 %v537_v61, %v526_v1 }
 0x1c9   :  { %608 = vmatpush1.bf16.msra.mxu0 %v584_v58  ;;  %2181 = vmatprep.subr.bf16.mxu1 %v2537_v31 }
 0x1ca   :  { %v2341_v5 = vpop.permute.xlu1 %2340  ;;  %609 = vmatprep.subr.bf16.mxu0 %v582_v62 }
 0x1cb   :  { %v2343_v8 = vunpack.i.h.bf16 %v2341_v5  ;;  %v2342_v9 = vunpack.i.l.bf16 %v2341_v5 }
 0x1cc   :  { %2182 = vmatpush3.bf16.msra.mxu1 %v583_v4 }
 0x1cd   :  { %v580_v11 = vpack.c.bf16 %v2343_v8, %v2338_v63  ;;  %610 = vmatpush1.bf16.msra.mxu0 %v581_v6  ;;  %2183 = vmatprep.subr.bf16.mxu1 %v2537_v31  ;;  %v516_v30 = vsel %vm125_vm8, %v2342_v9, %v2343_v8 }
 0x1ce   :  { %v510_v12 = vpop.permute.xlu1 %509  ;;  %v579_v18 = vpack.c.bf16 %v516_v30, %v505_v29 }
 0x1cf   :  { %v515_v20 = vsel %vm125_vm8, %v510_v12, %v2342_v9 }
 0x1d0   :  { %v578_v21 = vpack.c.bf16 %v515_v20, %v504_v19  ;;  %611 = vmatprep.subr.bf16.mxu0 %v579_v18  ;;  %2184 = vmatpush3.bf16.msra.mxu1 %v580_v11 }
 0x1d1   :  { %2185 = vmatprep.subr.bf16.mxu1 %v2537_v31 }
 0x1d2   :  { %v488_v24 = vpop.permute.xlu1 %487  ;;  %612 = vmatpush1.bf16.msra.mxu0 %v578_v21 }
 0x1d3   :  { %v493_v25 = vsel %vm101_vm10, %v488_v24, %v2347_v3  ;;  %613 = vmatprep.subr.bf16.mxu0 %v576_v22 }
 0x1d4   :  { %v575_v26 = vpack.c.bf16 %v493_v25, %v2671_v37  ;;  %2186 = vmatpush3.bf16.msra.mxu1 %v577_v23 }
 0x1d5   :  { %2191 = vmatprep.subr.bf16.mxu1 %v2537_v31 }
 0x1d6   :  { %614 = vmatpush1.bf16.msra.mxu0 %v575_v26 }
 0x1d7   :  { %2188 = vmatmul.mubr.msk.bf16.vlgmr.msra.gmra.mxu1 %vm206_vm11, %v2792_v34 }
 0x1d8   :  { %2193 = vmatprep.mubr.msk.bf16.mxu1 %vm2546_vm1, %v2537_v31 }
 0x1d9   :  { %2038 = vmatmul.mubr.msk.bf16.vlgmr.msra.gmra.mxu0 %vm206_vm11, %v2792_v34 }
 0x1da   :  { %752 = vmatprep.mubr.bf16.mxu0 %v2536_v7 }
 0x276   :  { %v295_v32 = vpop.f32.mrf.mxu1 }
 0x277   :  { %v319_v34 = vmul.f32 %v2869_v28, %v295_v32 }
 0x278   :  { %v254_v35 = vpop.f32.mrf.mxu0  ;;  %v2169_v36 = vpop.f32.mrf.mxu1 }
 0x279   :  { %v2881_v38 = vmul.f32 %v2873_v56, %v254_v35  ;;  %323 = vst.msk [vmem:[#allocation2 + $0x10] sm:$0xff] %vm322_vm13, %v319_v34  ;;  %v450_v13 = vmul.f32 %v319_v34, %v319_v34  ;;  %v444_v41 = vsel %vm322_vm13, %v319_v34, 0.0 }
 0x27a   :  { %v256_v17 = vpop.f32.mrf.mxu0  ;;  %v298_v39 = vpop.f32.mrf.mxu1 }
 0x27b   :  { %v448_v15 = vmul.f32 %v2881_v38, %v2881_v38  ;;  %v2887_v14 = vmul.f32 %v2877_v33, %v256_v17  ;;  %v452_v47 = vsel %vm322_vm13, %v450_v13, 0.0  ;;  %v2547_v17 = vmov 1   ;;  %v820_v39 = vld [vmem:[%s3609_s8] sm:$0xff] }
 0x27c   :  { %v258_v16 = vpop.f32.mrf.mxu0  ;;  %v2170_v40 = vpop.f32.mrf.mxu1  ;;  %2350 = vset.pattern.permute.xlu1 %v2547_v17 }
 0x27d   :  { %v449_v43 = vmul.f32 %v2887_v14, %v2887_v14  ;;  %v443_v44 = vadd.f32 %v2887_v14, %v2881_v38  ;;  %v688_v40 = vpack.c.bf16 %v2686_v42, %v2686_v42 }
 0x27e   :  { %v259_v45 = vpop.f32.mrf.mxu0 }
 0x27f   :  { %v445_v48 = vadd.f32 %v444_v41, %v443_v44  ;;  %v451_v49 = vadd.f32 %v449_v43, %v448_v15  ;;  %v687_v44 = vpack.c.bf16 %v2671_v37, %v2671_v37  ;;  %v689_v45 = vpack.c.bf16 %v2698_v46, %v2698_v46 }
 0x281   :  { %446 = vadd.xlane.f32.xlu0 %v445_v48  ;;  %v453_v50 = vadd.f32 %v452_v47, %v451_v49  ;;  %v842_v48 = vld [vmem:[#allocation2 + $0x10] sm:$0xff] }
 0x283   :  { %v2895_v51 = vpop.f32.mrf.mxu1 }
 0x284   :  { %v2897_v52 = vpop.f32.mrf.mxu0 }
 0x285   :  { %v2175_v53 = vpop.f32.mrf.mxu1  ;;  %454 = vadd.xlane.f32.xlu0 %v453_v50 }
 0x286   :  { %v2899_v54 = vpop.f32.mrf.mxu0 }
 0x287   :  { %v437_v55 = vpop.f32.mrf.mxu1 }
 0x288   :  { %v397_v57 = vpop.f32.mrf.mxu0 }
 0x289   :  { %v2176_v58 = vpop.f32.mrf.mxu1 }
 0x28a   :  { %v398_v59 = vpop.f32.mrf.mxu0 }
 0x297   :  { %v674_v60 = vpop.f32.mrf.mxu1 }
 0x298   :  { %v682_v61 = vmul.f32 %v674_v60, %v2869_v28 }
 0x299   :  { %v633_v62 = vpop.f32.mrf.mxu0  ;;  %v2189_v63 = vpop.f32.mrf.mxu1 }
 0x29a   :  { %v680_v0 = vmul.f32 %v633_v62, %v2873_v56  ;;  %686 = vst.msk [vmem:[#allocation2 + $0x28] sm:$0xff] %vm322_vm13, %v682_v61  ;;  %v812_v3 = vmul.f32 %v682_v61, %v682_v61  ;;  %v806_v8 = vsel %vm322_vm13, %v682_v61, 0.0 }
 0x29b   :  { %v635_v1 = vpop.f32.mrf.mxu0  ;;  %v677_v2 = vpop.f32.mrf.mxu1 }
 0x29c   :  { %v681_v4 = vmul.f32 %v635_v1, %v2877_v33  ;;  %v810_v9 = vmul.f32 %v680_v0, %v680_v0  ;;  %v814_v12 = vsel %vm322_vm13, %v812_v3, 0.0 }
 0x29d   :  { %v637_v5 = vpop.f32.mrf.mxu0  ;;  %v2190_v6 = vpop.f32.mrf.mxu1 }
 0x29e   :  { %v811_v11 = vmul.f32 %v681_v4, %v681_v4  ;;  %v805_v29 = vadd.f32 %v681_v4, %v680_v0 }
 0x29f   :  { %v638_v30 = vpop.f32.mrf.mxu0 }
 0x2a0   :  { %v807_v18 = vadd.f32 %v806_v8, %v805_v29  ;;  %v813_v10 = vadd.f32 %v811_v11, %v810_v9 }
 0x2a1   :  { %v1203_v58 = vld [vmem:[#allocation2 + $0x28] sm:$0xff] }
 0x2a2   :  { %808 = vadd.xlane.f32.xlu1 %v807_v18  ;;  %v815_v19 = vadd.f32 %v814_v12, %v813_v10 }
 0x2a4   :  { %816 = vadd.xlane.f32.xlu0 %v815_v19 }
 0x30a   :  { %v447_v20 = vpop.xlane.xlu0 %446 }
 0x30e   :  { %v455_v21 = vpop.xlane.xlu0 %454 }
 0x32b   :  { %v809_v22 = vpop.xlane.xlu1 %808 }
 0x32c   :  { %v818_v23 = vadd.f32 %v809_v22, %v447_v20 }
 0x32d   :  { %v817_v24 = vpop.xlane.xlu0 %816 }
 0x32e   :  { %v821_v25 = vmul.f32 0.001953125, %v818_v23  ;;  %v819_v26 = vadd.f32 %v817_v24, %v455_v21 }
 0x330   :  { %v823_v27 = vmul.f32 %v821_v25, %v821_v25  ;;  %v822_v32 = vmul.f32 0.001953125, %v819_v26 }
 0x332   :  { %v824_v34 = vsub.f32 %v822_v32, %v823_v27 }
 0x334   :  { %v825_v35 = vmax.f32 %v824_v34, 0.0 }
 0x336   :  { %v826_v36 = vadd.f32 1e-05, %v825_v35 }
 0x338   :  { %2509 = vrsqrt.f32 %v826_v36 }
 0x345   :  { %v2510_v13 = vpop.eup %2509 }
 0x346   :  { %v828_v15 = vmul.f32 %v2510_v13, %v820_v39 }
 0x348   :  { %845 = vperm.xlu0 %2349, %v828_v15   ;;  %v829_v16 = vmul.f32 %v828_v15, %v821_v25 }
 0x34a   :  { %831 = vrot.lane.b32.xlu1 %v829_v16, %s2548_s13 }
 0x34c   :  { %702 = vrot.lane.b32.xlu0 %v688_v40, %s2544_s2 }
 0x3bc   :  { %v832_v41 = vpop.permute.xlu1 %831 }
 0x3bd   :  { %v834_v43 = vsub.f32 %v820_v39, %v832_v41 }
 0x3bf   :  { %853 = vperm.xlu1 %2350, %v834_v43  }
 0x3c3   :  { %700 = vrot.lane.b32.xlu1 %v687_v44, %s2544_s2  ;;  %v846_v47 = vpop.permute.xlu0 %845 }
 0x3c4   :  { %v848_v49 = vmul.f32 %v846_v47, %v2881_v38  ;;  %v849_v42 = vmul.f32 %v846_v47, %v2887_v14  ;;  %v850_v50 = vmul.f32 %v846_v47, %v842_v48  ;;  %v1204_v53 = vmul.f32 %v846_v47, %v680_v0 }
 0x3c5   :  { %v1205_v55 = vmul.f32 %v846_v47, %v681_v4  ;;  %v1206_v62 = vmul.f32 %v1203_v58, %v846_v47 }
 0x3c7   :  { %704 = vrot.lane.b32.xlu1 %v689_v45, %s2544_s2  ;;  %v703_v9 = vpop.permute.xlu0 %702 }
 0x43a   :  { %v854_v57 = vpop.permute.xlu1 %853 }
 0x43b   :  { %v856_v59 = vadd.f32 %v854_v57, %v848_v49  ;;  %v857_v37 = vadd.f32 %v854_v57, %v849_v42  ;;  %v858_v60 = vadd.f32 %v854_v57, %v850_v50  ;;  %v1207_v61 = vadd.f32 %v1204_v53, %v854_v57  ;;  %v690_v42 = vld [vmem:[%s3607_s6] sm:$0xf] }
 0x43c   :  { %v1208_v63 = vadd.f32 %v1205_v55, %v854_v57  ;;  %v1209_v5 = vadd.f32 %v1206_v62, %v854_v57 }
 0x43d   :  { %v859_v46 = vmax.f32 %v856_v59, 0.0  ;;  %v860_v1 = vmax.f32 %v857_v37, 0.0  ;;  %v861_v2 = vmax.f32 %v858_v60, 0.0  ;;  %v1210_v3 = vmax.f32 %v1207_v61, 0.0 }
 0x43e   :  { %v1211_v6 = vmax.f32 %v1208_v63, 0.0  ;;  %v701_v38 = vpop.permute.xlu1 %700  ;;  %v1212_v18 = vmax.f32 %v1209_v5, 0.0 }
 0x43f   :  { %v2924_v14 = vmul.f32 %v859_v46, %v2873_v56  ;;  %v2927_v0 = vmul.f32 %v860_v1, %v2877_v33  ;;  %v864_v4 = vmul.f32 %v861_v2, %v2869_v28  ;;  %v2931_v8 = vmul.f32 %v1210_v3, %v2873_v56 }
 0x440   :  { %v2934_v11 = vmul.f32 %v1211_v6, %v2877_v33  ;;  %v706_v29 = vsel %vm137_vm7, %v701_v38, %v703_v9  ;;  %v1215_v21 = vmul.f32 %v1212_v18, %v2869_v28 }
 0x441   :  { %867 = vst.msk [vmem:[#allocation5 + $0x18] sm:$0xff] %vm322_vm13, %v864_v4  ;;  %v2366_v30 = vpack.i.bf16 %v2927_v0, %v2924_v14  ;;  %v712_v20 = vsel %vm210_vm3, %v706_v29, 0 }
 0x442   :  { %v705_v12 = vpop.permute.xlu1 %704  ;;  %v2456_v32 = vpack.i.bf16 %v2934_v11, %v2931_v8 }
 0x443   :  { %v707_v10 = vsel %vm137_vm7, %v703_v9, %v705_v12  ;;  %v718_v19 = vsel %vm210_vm3, %v705_v12, 0  ;;  %2367 = vrot.lane.b32.xlu0 %v2366_v30, %s2544_s2  ;;  %2352 = vrot.lane.b32.xlu1 %v2366_v30, %s2538_s17 }
 0x444   :  { %2040 = vmatprep.subr.msk.bf16.mxu0 %vm210_vm3, %v707_v10  ;;  %2192 = vmatpush3.bf16.msra.mxu1 %v718_v19 }
 0x445   :  { %735 = vmatpush1.bf16.msra.mxu0 %v712_v20  ;;  %2197 = vmatprep.subr.bf16.mxu1 %v2537_v31 }
 0x447   :  { %2372 = vrot.lane.b32.xlu0 %v2366_v30, %s2539_s18  ;;  %2357 = vrot.lane.b32.xlu1 %v2366_v30, %s2540_s21 }
 0x448   :  { %v2950_v22 = vld [vmem:[#allocation5 + $0x18] sm:$0xff]  ;;  %2194 = vmatmul.mubr.msk.bf16.vlgmr.msra.gmra.mxu1 %vm346_vm12, %v690_v42  ;;  %2041 = vmatmul.mubr.msk.bf16.vlgmr.msra.gmra.mxu0 %vm346_vm12, %v690_v42 }
 0x449   :  { %1218 = vst.msk [vmem:[#allocation5 + $0x18] sm:$0xff] %vm322_vm13, %v1215_v21  ;;  %v2381_v23 = vpack.i.bf16 %v2537_v31, %v2950_v22  ;;  %v2406_v26 = vpack.i.bf16 %v2931_v8, %v2950_v22  ;;  %2207 = vmatprep.mubr.msk.bf16.mxu1 %vm2546_vm1, %v2537_v31  ;;  %1133 = vmatprep.mubr.bf16.mxu0 %v2536_v7 }
 0x44b   :  { %2377 = vrot.lane.b32.xlu0 %v2366_v30, %s2545_s0  ;;  %2362 = vrot.lane.b32.xlu1 %v2366_v30, %s2541_s22 }
 0x44f   :  { %2387 = vrot.lane.b32.xlu0 %v2366_v30, %s2542_s23  ;;  %2382 = vrot.lane.b32.xlu1 %v2381_v23, %s2545_s0 }
 0x450   :  { %v2959_v24 = vld [vmem:[#allocation5 + $0x18] sm:$0xff] }
 0x451   :  { %v2431_v25 = vpack.i.bf16 %v2959_v24, %v2934_v11  ;;  %v2461_v27 = vpack.i.bf16 %v2537_v31, %v2959_v24 }
 0x453   :  { %2397 = vrot.lane.b32.xlu0 %v2366_v30, %s2543_s26  ;;  %2392 = vrot.lane.b32.xlu1 %v2381_v23, %s2542_s23 }
 0x457   :  { %2402 = vrot.lane.b32.xlu1 %v2381_v23, %s2543_s26  ;;  %2432 = vrot.lane.b32.xlu0 %v2431_v25, %s2538_s17 }
 0x45b   :  { %2407 = vrot.lane.b32.xlu1 %v2406_v26, %s2538_s17  ;;  %2442 = vrot.lane.b32.xlu0 %v2431_v25, %s2541_s22 }
 0x45f   :  { %2412 = vrot.lane.b32.xlu1 %v2406_v26, %s2540_s21  ;;  %2452 = vrot.lane.b32.xlu0 %v2431_v25, %s2539_s18 }
 0x463   :  { %2417 = vrot.lane.b32.xlu1 %v2406_v26, %s2541_s22  ;;  %2462 = vrot.lane.b32.xlu0 %v2461_v27, %s2545_s0 }
 0x467   :  { %2422 = vrot.lane.b32.xlu1 %v2406_v26, %s2544_s2  ;;  %2472 = vrot.lane.b32.xlu0 %v2461_v27, %s2542_s23 }
 0x46b   :  { %2427 = vrot.lane.b32.xlu1 %v2406_v26, %s2539_s18  ;;  %2482 = vrot.lane.b32.xlu0 %v2461_v27, %s2543_s26 }
 0x46f   :  { %2437 = vrot.lane.b32.xlu1 %v2431_v25, %s2540_s21 }
 0x473   :  { %2447 = vrot.lane.b32.xlu1 %v2431_v25, %s2544_s2 }
 0x477   :  { %2457 = vrot.lane.b32.xlu1 %v2456_v32, %s2545_s0 }
 0x47b   :  { %2467 = vrot.lane.b32.xlu1 %v2456_v32, %s2542_s23 }
 0x47f   :  { %2477 = vrot.lane.b32.xlu1 %v2456_v32, %s2543_s26 }
 0x4b5   :  { %v2988_v34 = vpop.permute.xlu1 %2352  ;;  %v2993_v36 = vpop.permute.xlu0 %2367 }
 0x4b6   :  { %v2991_v35 = vunpack.i.l.bf16 %v2988_v34  ;;  %v2369_v45 = vunpack.i.l.bf16 %v2993_v36  ;;  %v2355_v55 = vunpack.i.h.bf16 %v2988_v34  ;;  %v2370_v30 = vunpack.i.h.bf16 %v2993_v36 }
 0x4b8   :  { %v997_v17 = vpack.c.bf16 %v2991_v35, %v2991_v35 }
 0x4b9   :  { %v2997_v39 = vpop.permute.xlu1 %2357  ;;  %v3000_v13 = vpop.permute.xlu0 %2372 }
 0x4ba   :  { %1053 = vrot.lane.b32.xlu0 %v997_v17, %s2549_s9  ;;  %v2359_v16 = vunpack.i.l.bf16 %v2997_v39  ;;  %v2374_v41 = vunpack.i.l.bf16 %v3000_v13  ;;  %v2360_v60 = vunpack.i.h.bf16 %v2997_v39  ;;  %v2375_v12 = vunpack.i.h.bf16 %v3000_v13 }
 0x4bc   :  { %v989_v47 = vpack.c.bf16 %v2374_v41, %v2369_v45  ;;  %v951_v1 = vsel %vm161_vm4, %v2359_v16, %v2360_v60 }
 0x4bd   :  { %v3002_v15 = vpop.permute.xlu1 %2362  ;;  %v3043_v3 = vpop.permute.xlu0 %2377 }
 0x4be   :  { %v2364_v40 = vunpack.i.l.bf16 %v3002_v15  ;;  %v2365_v57 = vunpack.i.h.bf16 %v3002_v15  ;;  %v2380_v26 = vunpack.i.h.bf16 %v3043_v3 }
 0x4c0   :  { %v993_v43 = vpack.c.bf16 %v2364_v40, %v2359_v16  ;;  %v963_v61 = vsel %vm173_vm5, %v2364_v40, %v2365_v57 }
 0x4c1   :  { %v3007_v44 = vpop.permute.xlu1 %2382  ;;  %v994_v2 = vpack.c.bf16 %v963_v61, %v951_v1  ;;  %v2388_v9 = vpop.permute.xlu0 %2387 }
 0x4c2   :  { %1045 = vrot.lane.b32.xlu0 %v993_v43, %s2549_s9  ;;  %v2390_v19 = vunpack.i.h.bf16 %v2388_v9  ;;  %v2384_v20 = vunpack.i.l.bf16 %v3007_v44  ;;  %v2389_v39 = vunpack.i.l.bf16 %v2388_v9  ;;  %v2385_v15 = vunpack.i.h.bf16 %v3007_v44 }
 0x4c3   :  { %v975_v44 = vsel %vm185_vm2, %v2991_v35, %v2355_v55 }
 0x4c4   :  { %v901_v16 = vsel %vm113_vm9, %v2380_v26, %v2384_v20  ;;  %v998_v1 = vpack.c.bf16 %v975_v44, %v975_v44 }
 0x4c5   :  { %v2393_v48 = vpop.permute.xlu1 %2392  ;;  %v2398_v40 = vpop.permute.xlu0 %2397 }
 0x4c6   :  { %1037 = vrot.lane.b32.xlu0 %v989_v47, %s2549_s9  ;;  %v2394_v18 = vunpack.i.l.bf16 %v2393_v48  ;;  %v2395_v27 = vunpack.i.h.bf16 %v2393_v48  ;;  %v2379_v47 = vunpack.i.l.bf16 %v3043_v3 }
 0x4c8   :  { %v916_v32 = vsel %vm125_vm8, %v2390_v19, %v2394_v18  ;;  %v988_v34 = vpack.c.bf16 %v2394_v18, %v2384_v20  ;;  %v914_v48 = vsel %vm125_vm8, %v2395_v27, %v2389_v39 }
 0x4c9   :  { %v3016_v49 = vpop.permute.xlu1 %2402  ;;  %v987_v43 = vpack.c.bf16 %v916_v32, %v901_v16 }
 0x4ca   :  { %v2404_v17 = vunpack.i.l.bf16 %v3016_v49 }
 0x4cc   :  { %v984_v42 = vpack.c.bf16 %v2404_v17, %v2950_v22  ;;  %v3077_v22 = vpop.permute.xlu0 %2432 }
 0x4cd   :  { %v3026_v50 = vpop.permute.xlu1 %2407 }
 0x4ce   :  { %v2409_v53 = vunpack.i.l.bf16 %v3026_v50  ;;  %v3089_v9 = vunpack.i.h.bf16 %v3026_v50 }
 0x4d0   :  { %v1000_v58 = vpack.c.bf16 %v2409_v53, %v2409_v53  ;;  %v976_v37 = vsel %vm185_vm2, %v2355_v55, %v2409_v53  ;;  %v2400_v53 = vunpack.i.h.bf16 %v2398_v40  ;;  %v1348_v50 = vpack.c.bf16 %v3089_v9, %v3089_v9 }
 0x4d1   :  { %v3031_v59 = vpop.permute.xlu1 %2412  ;;  %v999_v31 = vpack.c.bf16 %v976_v37, %v976_v37 }
 0x4d2   :  { %1059 = vrot.lane.b32.xlu1 %v1000_v58, %s2549_s9  ;;  %v2414_v63 = vunpack.i.l.bf16 %v3031_v59  ;;  %v899_v58 = vsel %vm113_vm9, %v2385_v15, %v2379_v47  ;;  %v886_v61 = vsel %vm101_vm10, %v2400_v53, %v2404_v17  ;;  %v2415_v36 = vunpack.i.h.bf16 %v3031_v59 }
 0x4d3   :  { %1057 = vrot.lane.b32.xlu0 %v999_v31, %s2549_s9  ;;  %v985_v37 = vpack.c.bf16 %v914_v48, %v899_v58  ;;  %v2405_v31 = vunpack.i.h.bf16 %v3016_v49 }
 0x4d4   :  { %v952_v35 = vsel %vm161_vm4, %v2360_v60, %v2414_v63  ;;  %v927_v60 = vsel %vm137_vm7, %v2369_v45, %v2370_v30 }
 0x4d5   :  { %v3038_v62 = vpop.permute.xlu1 %2417 }
 0x4d6   :  { %v2419_v46 = vunpack.i.l.bf16 %v3038_v62 }
 0x4d7   :  { %1047 = vrot.lane.b32.xlu0 %v994_v2, %s2549_s9  ;;  %v2399_v2 = vunpack.i.l.bf16 %v2398_v40 }
 0x4d8   :  { %v996_v5 = vpack.c.bf16 %v2419_v46, %v2414_v63  ;;  %v964_v3 = vsel %vm173_vm5, %v2365_v57, %v2419_v46  ;;  %v3094_v57 = vld [vmem:[#allocation5] sm:$0xff]  ;;  %v3100_v63 = vpop.permute.xlu0 %2442  ;;  %v2420_v46 = vunpack.i.h.bf16 %v3038_v62  ;;  %v2435_v62 = vunpack.i.h.bf16 %v3077_v22 }
 0x4d9   :  { %v3046_v6 = vpop.permute.xlu1 %2422  ;;  %v884_v55 = vsel %vm101_vm10, %v2405_v31, %v2399_v2  ;;  %v995_v49 = vpack.c.bf16 %v964_v3, %v952_v35  ;;  %v2444_v16 = vunpack.i.l.bf16 %v3100_v63 }
 0x4da   :  { %1051 = vrot.lane.b32.xlu1 %v996_v5, %s2549_s9  ;;  %v2424_v38 = vunpack.i.l.bf16 %v3046_v6  ;;  %v983_v5 = vpack.c.bf16 %v886_v61, %v2927_v0  ;;  %v981_v0 = vpack.c.bf16 %v884_v55, %v3094_v57  ;;  %v2425_v59 = vunpack.i.h.bf16 %v3046_v6 }
 0x4db   :  { %v1351_v17 = vpack.c.bf16 %v2435_v62, %v2435_v62 }
 0x4dc   :  { %v928_v21 = vsel %vm137_vm7, %v2370_v30, %v2424_v38  ;;  %v885_v30 = vsel %vm101_vm10, %v2399_v2, %v2400_v53 }
 0x4dd   :  { %v3050_v4 = vpop.permute.xlu1 %2427 }
 0x4de   :  { %v2429_v29 = vunpack.i.l.bf16 %v3050_v4  ;;  %v2430_v20 = vunpack.i.h.bf16 %v3050_v4 }
 0x4e0   :  { %v992_v10 = vpack.c.bf16 %v2429_v29, %v2424_v38  ;;  %v940_v23 = vsel %vm149_vm6, %v2375_v12, %v2429_v29  ;;  %v939_v38 = vsel %vm149_vm6, %v2374_v41, %v2375_v12  ;;  %v915_v41 = vsel %vm125_vm8, %v2389_v39, %v2390_v19 }
 0x4e1   :  { %v991_v25 = vpack.c.bf16 %v940_v23, %v928_v21  ;;  %v3091_v29 = vpop.permute.xlu1 %2437  ;;  %v990_v13 = vpack.c.bf16 %v939_v38, %v927_v60  ;;  %v900_v12 = vsel %vm113_vm9, %v2379_v47, %v2380_v26  ;;  %v1344_v19 = vpack.c.bf16 %v2420_v46, %v2415_v36 }
 0x4e2   :  { %1043 = vrot.lane.b32.xlu1 %v992_v10, %s2549_s9  ;;  %v986_v18 = vpack.c.bf16 %v915_v41, %v900_v12  ;;  %v3114_v10 = vpop.permute.xlu0 %2452  ;;  %v2434_v21 = vunpack.i.l.bf16 %v3077_v22  ;;  %v982_v23 = vpack.c.bf16 %v885_v30, %v2924_v14  ;;  %v2439_v32 = vunpack.i.l.bf16 %v3091_v29 }
 0x4e3   :  { %1041 = vrot.lane.b32.xlu0 %v991_v25, %s2549_s9  ;;  %v1340_v25 = vpack.c.bf16 %v2430_v20, %v2425_v59  ;;  %v2440_v14 = vunpack.i.h.bf16 %v3091_v29  ;;  %v2445_v39 = vunpack.i.h.bf16 %v3100_v63  ;;  %v2455_v53 = vunpack.i.h.bf16 %v3114_v10 }
 0x4e4   :  { %v1302_v47 = vsel %vm161_vm4, %v2415_v36, %v2439_v32  ;;  %v2454_v58 = vunpack.i.l.bf16 %v3114_v10  ;;  %v1326_v60 = vsel %vm185_vm2, %v3089_v9, %v2434_v21 }
 0x4e5   :  { %v3110_v45 = vpop.permute.xlu1 %2447  ;;  %v1347_v48 = vpack.c.bf16 %v2445_v39, %v2440_v14  ;;  %v1303_v10 = vsel %vm161_vm4, %v2439_v32, %v2440_v14 }
 0x4e6   :  { %1035 = vrot.lane.b32.xlu1 %v988_v34, %s2549_s9  ;;  %v2463_v27 = vpop.permute.xlu0 %2462  ;;  %v1327_v34 = vsel %vm185_vm2, %v2434_v21, %v2435_v62  ;;  %v2450_v40 = vunpack.i.h.bf16 %v3110_v45  ;;  %v1315_v62 = vsel %vm173_vm5, %v2444_v16, %v2445_v39  ;;  %vm1662_vm2 = vcmask 105472  }
 0x4e7   :  { %1033 = vrot.lane.b32.xlu0 %v987_v43, %s2549_s9  ;;  %v1350_v15 = vpack.c.bf16 %v1327_v34, %v1327_v34  ;;  %v2449_v43 = vunpack.i.l.bf16 %v3110_v45  ;;  %v2464_v35 = vunpack.i.l.bf16 %v2463_v27  ;;  %v2465_v12 = vunpack.i.h.bf16 %v2463_v27 }
 0x4e8   :  { %v1343_v22 = vpack.c.bf16 %v2455_v53, %v2450_v40  ;;  %v1349_v45 = vpack.c.bf16 %v1326_v60, %v1326_v60  ;;  %v1290_v34 = vsel %vm149_vm6, %v2430_v20, %v2454_v58 }
 0x4e9   :  { %v3127_v26 = vpop.permute.xlu1 %2457  ;;  %v1278_v27 = vsel %vm137_vm7, %v2425_v59, %v2449_v43 }
 0x4ea   :  { %1027 = vrot.lane.b32.xlu1 %v984_v42, %s2549_s9  ;;  %v2473_v44 = vpop.permute.xlu0 %2472  ;;  %v2460_v3 = vunpack.i.h.bf16 %v3127_v26  ;;  %v1341_v14 = vpack.c.bf16 %v1290_v34, %v1278_v27 }
 0x4eb   :  { %1029 = vrot.lane.b32.xlu0 %v985_v37, %s2549_s9  ;;  %v1314_v37 = vsel %vm173_vm5, %v2420_v46, %v2444_v16  ;;  %v2474_v2 = vunpack.i.l.bf16 %v2473_v44  ;;  %v2475_v63 = vunpack.i.h.bf16 %v2473_v44 }
 0x4ec   :  { %v1345_v31 = vpack.c.bf16 %v1314_v37, %v1302_v47  ;;  %v1252_v41 = vsel %vm113_vm9, %v2460_v3, %v2464_v35 }
 0x4ed   :  { %v2468_v42 = vpop.permute.xlu1 %2467  ;;  %v1339_v29 = vpack.c.bf16 %v2474_v2, %v2464_v35 }
 0x4ee   :  { %1055 = vrot.lane.b32.xlu1 %v998_v1, %s2549_s9  ;;  %v2470_v61 = vunpack.i.h.bf16 %v2468_v42  ;;  %v1279_v1 = vsel %vm137_vm7, %v2449_v43, %v2450_v40 }
 0x4ef   :  { %1025 = vrot.lane.b32.xlu0 %v983_v5, %s2549_s9  ;;  %v1291_v5 = vsel %vm149_vm6, %v2454_v58, %v2455_v53 }
 0x4f0   :  { %v1342_v55 = vpack.c.bf16 %v1291_v5, %v1279_v1  ;;  %v1267_v38 = vsel %vm125_vm8, %v2470_v61, %v2474_v2 }
 0x4f1   :  { %v1338_v46 = vpack.c.bf16 %v1267_v38, %v1252_v41 }
 0x4f2   :  { %1049 = vrot.lane.b32.xlu1 %v995_v49, %s2549_s9  ;;  %v2469_v49 = vunpack.i.l.bf16 %v2468_v42 }
 0x4f3   :  { %1021 = vrot.lane.b32.xlu0 %v981_v0, %s2549_s9  ;;  %v2478_v0 = vpop.permute.xlu1 %2477 }
 0x4f4   :  { %v2480_v36 = vunpack.i.h.bf16 %v2478_v0  ;;  %v2479_v21 = vunpack.i.l.bf16 %v2478_v0  ;;  %v1266_v39 = vsel %vm125_vm8, %v2469_v49, %v2470_v61 }
 0x4f6   :  { %1039 = vrot.lane.b32.xlu1 %v990_v13, %s2549_s9  ;;  %v2459_v13 = vunpack.i.l.bf16 %v3127_v26  ;;  %v1236_v4 = vsel %vm101_vm10, %v2479_v21, %v2480_v36 }
 0x4f7   :  { %1404 = vrot.lane.b32.xlu0 %v1348_v50, %s2549_s9  ;;  %v2483_v50 = vpop.permute.xlu0 %2482  ;;  %v1333_v20 = vpack.c.bf16 %v1236_v4, %v2931_v8 }
 0x4f8   :  { %v2484_v30 = vunpack.i.l.bf16 %v2483_v50  ;;  %v1250_v9 = vsel %vm113_vm9, %v2465_v12, %v2459_v13  ;;  %v2485_v26 = vunpack.i.h.bf16 %v2483_v50  ;;  %v1251_v6 = vsel %vm113_vm9, %v2459_v13, %v2460_v3 }
 0x4fa   :  { %1031 = vrot.lane.b32.xlu1 %v986_v18, %s2549_s9  ;;  %v1265_v18 = vsel %vm125_vm8, %v2475_v63, %v2469_v49  ;;  %v1335_v59 = vpack.c.bf16 %v2484_v30, %v2959_v24 }
 0x4fb   :  { %1396 = vrot.lane.b32.xlu0 %v1344_v19, %s2549_s9  ;;  %v1336_v19 = vpack.c.bf16 %v1265_v18, %v1250_v9 }
 0x4fe   :  { %1023 = vrot.lane.b32.xlu1 %v982_v23, %s2549_s9  ;;  %v1237_v23 = vsel %vm101_vm10, %v2480_v36, %v2484_v30 }
 0x4ff   :  { %1388 = vrot.lane.b32.xlu0 %v1340_v25, %s2549_s9  ;;  %v1346_v25 = vpack.c.bf16 %v1315_v62, %v1303_v10  ;;  %v1334_v32 = vpack.c.bf16 %v1237_v23, %v2934_v11  ;;  %v1337_v11 = vpack.c.bf16 %v1266_v39, %v1251_v6 }
 0x502   :  { %1410 = vrot.lane.b32.xlu1 %v1351_v17, %s2549_s9  ;;  %v1235_v17 = vsel %vm101_vm10, %v2485_v26, %v2479_v21  ;;  %v3211_v21 = vld [vmem:[%s3606_s5] sm:$0xf] }
 0x503   :  { %1408 = vrot.lane.b32.xlu0 %v1350_v15, %s2549_s9  ;;  %v1332_v15 = vpack.c.bf16 %v1235_v17, %v3094_v57 }
 0x506   :  { %1402 = vrot.lane.b32.xlu1 %v1347_v48, %s2549_s9 }
 0x507   :  { %1398 = vrot.lane.b32.xlu0 %v1345_v31, %s2549_s9 }
 0x50a   :  { %1394 = vrot.lane.b32.xlu1 %v1343_v22, %s2549_s9 }
 0x50b   :  { %1392 = vrot.lane.b32.xlu0 %v1342_v55, %s2549_s9 }
 0x50e   :  { %1386 = vrot.lane.b32.xlu1 %v1339_v29, %s2549_s9 }
 0x50f   :  { %1384 = vrot.lane.b32.xlu0 %v1338_v46, %s2549_s9 }
 0x512   :  { %1406 = vrot.lane.b32.xlu1 %v1349_v45, %s2549_s9 }
 0x513   :  { %1380 = vrot.lane.b32.xlu0 %v1336_v19, %s2549_s9 }
 0x516   :  { %1400 = vrot.lane.b32.xlu1 %v1346_v25, %s2549_s9 }
 0x517   :  { %1376 = vrot.lane.b32.xlu0 %v1334_v32, %s2549_s9 }
 0x51a   :  { %1390 = vrot.lane.b32.xlu1 %v1341_v14, %s2549_s9 }
 0x51b   :  { %1372 = vrot.lane.b32.xlu0 %v1332_v15, %s2549_s9 }
 0x51e   :  { %1382 = vrot.lane.b32.xlu1 %v1337_v11, %s2549_s9 }
 0x522   :  { %1374 = vrot.lane.b32.xlu1 %v1333_v20, %s2549_s9 }
 0x526   :  { %1378 = vrot.lane.b32.xlu1 %v1335_v59, %s2549_s9 }
 0x52c   :  { %v1054_v16 = vpop.permute.xlu0 %1053 }
 0x534   :  { %v1046_v40 = vpop.permute.xlu0 %1045 }
 0x538   :  { %v1038_v43 = vpop.permute.xlu0 %1037 }
 0x544   :  { %v1060_v47 = vpop.permute.xlu1 %1059 }
 0x545   :  { %v1058_v48 = vpop.permute.xlu0 %1057 }
 0x546   :  { %v1076_v42 = vsel %vm1061_vm15, %v1058_v48, %v1060_v47  ;;  %v3231_v47 = vpop.f32.mrf.mxu0 }
 0x547   :  { %v1099_v53 = vsel %vm210_vm3, %v1076_v42, 0 }
 0x548   :  { %2198 = vmatpush3.bf16.msra.mxu1 %v1099_v53  ;;  %v3236_v53 = vpop.f32.mrf.mxu0 }
 0x549   :  { %2199 = vmatprep.subr.bf16.mxu1 %v3094_v57  ;;  %v1048_v58 = vpop.permute.xlu0 %1047 }
 0x54a   :  { %v1071_v29 = vsel %vm1061_vm15, %v1046_v40, %v1048_v58 }
 0x54c   :  { %v1052_v8 = vpop.permute.xlu1 %1051 }
 0x554   :  { %v1044_v44 = vpop.permute.xlu1 %1043 }
 0x555   :  { %v1042_v37 = vpop.permute.xlu0 %1041 }
 0x556   :  { %v1070_v63 = vsel %vm1061_vm15, %v1042_v37, %v1044_v44 }
 0x558   :  { %v1036_v24 = vpop.permute.xlu1 %1035 }
 0x559   :  { %v1034_v31 = vpop.permute.xlu0 %1033 }
 0x55a   :  { %v1067_v12 = vsel %vm1061_vm15, %v1034_v31, %v1036_v24 }
 0x55c   :  { %v1028_v61 = vpop.permute.xlu1 %1027 }
 0x55d   :  { %v1030_v1 = vpop.permute.xlu0 %1029 }
 0x560   :  { %v1056_v2 = vpop.permute.xlu1 %1055 }
 0x561   :  { %v1074_v22 = vsel %vm1061_vm15, %v1054_v16, %v1056_v2  ;;  %v1075_v3 = vsel %vm1061_vm15, %v1056_v2, %v1058_v48  ;;  %v1026_v35 = vpop.permute.xlu0 %1025  ;;  %v3234_v48 = vpop.f32.mrf.mxu1 }
 0x562   :  { %v1093_v5 = vsel %vm210_vm3, %v1074_v22, 0  ;;  %2043 = vmatprep.subr.msk.bf16.mxu0 %vm210_vm3, %v1075_v3  ;;  %v1064_v10 = vsel %vm1061_vm15, %v1026_v35, %v1028_v61 }
 0x563   :  { %1108 = vmatpush1.bf16.msra.mxu0 %v1093_v5 }
 0x564   :  { %v1050_v55 = vpop.permute.xlu1 %1049 }
 0x565   :  { %v1073_v49 = vsel %vm1061_vm15, %v1050_v55, %v1052_v8  ;;  %v1072_v38 = vsel %vm1061_vm15, %v1048_v58, %v1050_v55  ;;  %v1022_v0 = vpop.permute.xlu0 %1021 }
 0x566   :  { %1109 = vmatprep.subr.bf16.mxu0 %v1072_v38  ;;  %2200 = vmatpush3.bf16.msra.mxu1 %v1073_v49 }
 0x567   :  { %1110 = vmatpush1.bf16.msra.mxu0 %v1071_v29  ;;  %2201 = vmatprep.subr.bf16.mxu1 %v3094_v57 }
 0x568   :  { %v1040_v60 = vpop.permute.xlu1 %1039 }
 0x569   :  { %v1068_v13 = vsel %vm1061_vm15, %v1038_v43, %v1040_v60  ;;  %v1069_v41 = vsel %vm1061_vm15, %v1040_v60, %v1042_v37  ;;  %v1405_v50 = vpop.permute.xlu0 %1404  ;;  %v2195_v37 = vpop.f32.mrf.mxu1 }
 0x56a   :  { %1111 = vmatprep.subr.bf16.mxu0 %v1069_v41  ;;  %2202 = vmatpush3.bf16.msra.mxu1 %v1070_v63  ;;  %v2550_v37 = vmov 2  }
 0x56b   :  { %1112 = vmatpush1.bf16.msra.mxu0 %v1068_v13  ;;  %2203 = vmatprep.subr.bf16.mxu1 %v3094_v57  ;;  %v798_v61 = vpop.f32.mrf.mxu1 }
 0x56c   :  { %v1032_v46 = vpop.permute.xlu1 %1031  ;;  %2486 = vset.pattern.permute.xlu1 %v2550_v37  ;;  %v3346_v37 = vld [vmem:[%s3612_s11 + $0xe8] sm:$0xff] }
 0x56d   :  { %v1065_v18 = vsel %vm1061_vm15, %v1030_v1, %v1032_v46  ;;  %v1066_v36 = vsel %vm1061_vm15, %v1032_v46, %v1034_v31  ;;  %v1397_v45 = vpop.permute.xlu0 %1396  ;;  %v758_v31 = vpop.f32.mrf.mxu0 }
 0x56e   :  { %1113 = vmatprep.subr.bf16.mxu0 %v1066_v36  ;;  %2204 = vmatpush3.bf16.msra.mxu1 %v1067_v12 }
 0x56f   :  { %1114 = vmatpush1.bf16.msra.mxu0 %v1065_v18  ;;  %2205 = vmatprep.subr.bf16.mxu1 %v3094_v57  ;;  %v759_v2 = vpop.f32.mrf.mxu0 }
 0x570   :  { %v1024_v30 = vpop.permute.xlu1 %1023 }
 0x571   :  { %v1062_v9 = vsel %vm1061_vm15, %v1022_v0, %v1024_v30  ;;  %v1063_v19 = vsel %vm1061_vm15, %v1024_v30, %v1026_v35  ;;  %v1389_v62 = vpop.permute.xlu0 %1388  ;;  %v2196_v35 = vpop.f32.mrf.mxu1 }
 0x572   :  { %1115 = vmatprep.subr.bf16.mxu0 %v1063_v19  ;;  %2206 = vmatpush3.bf16.msra.mxu1 %v1064_v10 }
 0x573   :  { %1116 = vmatpush1.bf16.msra.mxu0 %v1062_v9  ;;  %2211 = vmatprep.subr.bf16.mxu1 %v3094_v57 }
 0x574   :  { %v1411_v23 = vpop.permute.xlu1 %1410 }
 0x575   :  { %2208 = vmatmul.mubr.msk.bf16.vlgmr.msra.gmra.mxu1 %vm206_vm11, %v3211_v21  ;;  %v1409_v25 = vpop.permute.xlu0 %1408 }
 0x576   :  { %2044 = vmatmul.mubr.msk.bf16.vlgmr.msra.gmra.mxu0 %vm206_vm11, %v3211_v21  ;;  %2221 = vmatprep.mubr.msk.bf16.mxu1 %vm2546_vm1, %v3094_v57  ;;  %v1426_v26 = vsel %vm1061_vm15, %v1409_v25, %v1411_v23 }
 0x577   :  { %1480 = vmatprep.mubr.bf16.mxu0 %v2536_v7  ;;  %v1446_v27 = vsel %vm210_vm3, %v1426_v26, 0 }
 0x578   :  { %v1403_v32 = vpop.permute.xlu1 %1402  ;;  %2212 = vmatpush3.bf16.msra.mxu1 %v1446_v27 }
 0x579   :  { %v1399_v34 = vpop.permute.xlu0 %1398  ;;  %2213 = vmatprep.subr.bf16.mxu1 %v3094_v57 }
 0x57a   :  { %v1421_v43 = vsel %vm1061_vm15, %v1397_v45, %v1399_v34 }
 0x57c   :  { %v1395_v17 = vpop.permute.xlu1 %1394 }
 0x57d   :  { %v1393_v14 = vpop.permute.xlu0 %1392 }
 0x57e   :  { %v1420_v8 = vsel %vm1061_vm15, %v1393_v14, %v1395_v17 }
 0x580   :  { %v1387_v39 = vpop.permute.xlu1 %1386 }
 0x581   :  { %v1385_v15 = vpop.permute.xlu0 %1384 }
 0x582   :  { %v1417_v22 = vsel %vm1061_vm15, %v1385_v15, %v1387_v39 }
 0x584   :  { %v1407_v6 = vpop.permute.xlu1 %1406 }
 0x585   :  { %v1424_v11 = vsel %vm1061_vm15, %v1405_v50, %v1407_v6  ;;  %v1425_v4 = vsel %vm1061_vm15, %v1407_v6, %v1409_v25  ;;  %v1381_v7 = vpop.permute.xlu0 %1380 }
 0x586   :  { %v1440_v20 = vsel %vm210_vm3, %v1424_v11, 0  ;;  %2046 = vmatprep.subr.msk.bf16.mxu0 %vm210_vm3, %v1425_v4 }
 0x587   :  { %1455 = vmatpush1.bf16.msra.mxu0 %v1440_v20 }
 0x588   :  { %v1401_v59 = vpop.permute.xlu1 %1400 }
 0x589   :  { %v1423_v16 = vsel %vm1061_vm15, %v1401_v59, %v1403_v32  ;;  %v1422_v40 = vsel %vm1061_vm15, %v1399_v34, %v1401_v59  ;;  %v1377_v24 = vpop.permute.xlu0 %1376 }
 0x58a   :  { %1456 = vmatprep.subr.bf16.mxu0 %v1422_v40  ;;  %2214 = vmatpush3.bf16.msra.mxu1 %v1423_v16 }
 0x58b   :  { %1457 = vmatpush1.bf16.msra.mxu0 %v1421_v43  ;;  %2215 = vmatprep.subr.bf16.mxu1 %v3094_v57 }
 0x58c   :  { %v1391_v42 = vpop.permute.xlu1 %1390 }
 0x58d   :  { %v1418_v58 = vsel %vm1061_vm15, %v1389_v62, %v1391_v42  ;;  %v1419_v44 = vsel %vm1061_vm15, %v1391_v42, %v1393_v14  ;;  %v1373_v55 = vpop.permute.xlu0 %1372 }
 0x58e   :  { %1458 = vmatprep.subr.bf16.mxu0 %v1419_v44  ;;  %2216 = vmatpush3.bf16.msra.mxu1 %v1420_v8  ;;  %v328_v44 = vld [vmem:[%s3608_s7] sm:$0xff] }
 0x58f   :  { %1459 = vmatpush1.bf16.msra.mxu0 %v1418_v58  ;;  %2217 = vmatprep.subr.bf16.mxu1 %v3094_v57 }
 0x590   :  { %v1383_v1 = vpop.permute.xlu1 %1382 }
 0x591   :  { %v1415_v3 = vsel %vm1061_vm15, %v1381_v7, %v1383_v1  ;;  %v1416_v5 = vsel %vm1061_vm15, %v1383_v1, %v1385_v15 }
 0x592   :  { %1460 = vmatprep.subr.bf16.mxu0 %v1416_v5  ;;  %2218 = vmatpush3.bf16.msra.mxu1 %v1417_v22 }
 0x593   :  { %1461 = vmatpush1.bf16.msra.mxu0 %v1415_v3  ;;  %2219 = vmatprep.subr.bf16.mxu1 %v3094_v57 }
 0x594   :  { %v1375_v49 = vpop.permute.xlu1 %1374 }
 0x595   :  { %v1412_v38 = vsel %vm1061_vm15, %v1373_v55, %v1375_v49  ;;  %v1413_v29 = vsel %vm1061_vm15, %v1375_v49, %v1377_v24 }
 0x596   :  { %1462 = vmatprep.subr.bf16.mxu0 %v1413_v29 }
 0x597   :  { %1463 = vmatpush1.bf16.msra.mxu0 %v1412_v38 }
 0x598   :  { %v1379_v0 = vpop.permute.xlu1 %1378 }
 0x599   :  { %v1414_v60 = vsel %vm1061_vm15, %v1377_v24, %v1379_v0 }
 0x59a   :  { %2047 = vmatmul.mubr.msk.bf16.vlgmr.msra.gmra.mxu0 %vm206_vm11, %v3211_v21  ;;  %2220 = vmatpush3.bf16.msra.mxu1 %v1414_v60 }
 0x59b   :  { %2225 = vmatprep.subr.mxu1 %v3094_v57 }
 0x59d   :  { %2222 = vmatmul.mubr.msk.bf16.vlgmr.msra.gmra.mxu1 %vm206_vm11, %v3211_v21 }
 0x59e   :  { %2229 = vmatprep.mubr.msk.f32.mxu1 %vm2546_vm1, %v3094_v57 }
 0x635   :  { %v1176_v63 = vpop.f32.mrf.mxu1 }
 0x636   :  { %v1135_v13 = vpop.f32.mrf.mxu0  ;;  %v1184_v41 = vmul.f32 %v1176_v63, %v2869_v28 }
 0x637   :  { %v3258_v50 = vmul.f32 %v1135_v13, %v2873_v56  ;;  %v2209_v46 = vpop.f32.mrf.mxu1 }
 0x638   :  { %v1137_v12 = vpop.f32.mrf.mxu0  ;;  %1187 = vst.msk [vmem:[#allocation4 + $0x10] sm:$0xff] %vm322_vm13, %v1184_v41  ;;  %v1195_v18 = vmul.f32 %v1184_v41, %v1184_v41  ;;  %v1189_v9 = vsel %vm322_vm13, %v1184_v41, 0.0 }
 0x639   :  { %v1193_v36 = vmul.f32 %v3258_v50, %v3258_v50  ;;  %v3264_v45 = vmul.f32 %v1137_v12, %v2877_v33  ;;  %v1179_v30 = vpop.f32.mrf.mxu1 }
 0x63a   :  { %v1139_v10 = vpop.f32.mrf.mxu0  ;;  %v1197_v25 = vsel %vm322_vm13, %v1195_v18, 0.0  ;;  %v2551_v18 = vmov 3  }
 0x63b   :  { %v1188_v19 = vadd.f32 %v3264_v45, %v3258_v50  ;;  %v1194_v62 = vmul.f32 %v3264_v45, %v3264_v45  ;;  %v2210_v21 = vpop.f32.mrf.mxu1 }
 0x63c   :  { %v1140_v23 = vpop.f32.mrf.mxu0 }
 0x63d   :  { %v1190_v26 = vadd.f32 %v1189_v9, %v1188_v19  ;;  %v1196_v27 = vadd.f32 %v1194_v62, %v1193_v36 }
 0x63f   :  { %1191 = vadd.xlane.f32.xlu0 %v1190_v26  ;;  %v1198_v32 = vadd.f32 %v1197_v25, %v1196_v27 }
 0x643   :  { %1199 = vadd.xlane.f32.xlu0 %v1198_v32 }
 0x65a   :  { %v1482_v34 = vpop.f32.mrf.mxu0 }
 0x65b   :  { %v3273_v17 = vmul.f32 %v1482_v34, %v2873_v56 }
 0x65c   :  { %v1484_v14 = vpop.f32.mrf.mxu0 }
 0x65d   :  { %v3276_v39 = vmul.f32 %v1484_v14, %v2877_v33  ;;  %v1523_v15 = vpop.f32.mrf.mxu1  ;;  %v1541_v4 = vmul.f32 %v3273_v17, %v3273_v17 }
 0x65e   :  { %v1531_v6 = vmul.f32 %v1523_v15, %v2869_v28  ;;  %v1486_v11 = vpop.f32.mrf.mxu0 }
 0x65f   :  { %v1536_v20 = vadd.f32 %v3276_v39, %v3273_v17  ;;  %v1542_v7 = vmul.f32 %v3276_v39, %v3276_v39  ;;  %v2223_v59 = vpop.f32.mrf.mxu1 }
 0x660   :  { %1535 = vst.msk [vmem:[#allocation4 + $0x28] sm:$0xff] %vm322_vm13, %v1531_v6  ;;  %v1543_v56 = vmul.f32 %v1531_v6, %v1531_v6  ;;  %v1487_v16 = vpop.f32.mrf.mxu0  ;;  %v1537_v33 = vsel %vm322_vm13, %v1531_v6, 0.0 }
 0x661   :  { %v1526_v40 = vpop.f32.mrf.mxu1  ;;  %v1538_v43 = vadd.f32 %v1537_v33, %v1536_v20  ;;  %v1544_v28 = vadd.f32 %v1542_v7, %v1541_v4 }
 0x662   :  { %v1545_v42 = vsel %vm322_vm13, %v1543_v56, 0.0 }
 0x663   :  { %v2224_v8 = vpop.f32.mrf.mxu1  ;;  %1539 = vadd.xlane.f32.xlu1 %v1538_v43  ;;  %v1546_v58 = vadd.f32 %v1545_v42, %v1544_v28  ;;  %v1597_v43 = vld [vmem:[%s3612_s11 + $0xf8] sm:$0xff]  ;;  %v3332_v42 = vld [vmem:[%s3612_s11 + $0xf0] sm:$0xff] }
 0x664   :  { %v3327_v28 = vld [vmem:[%s3612_s11 + $0x78] sm:$0xff]  ;;  %2081 = vmatprep.subr.mxu0 %v1597_v43 }
 0x665   :  { %1547 = vadd.xlane.f32.xlu0 %v1546_v58  ;;  %v3338_v58 = vld [vmem:[%s3612_s11 + $0x70] sm:$0xff]  ;;  %2082 = vmatpush3.msra.mxu0 %v3327_v28 }
 0x666   :  { %2083 = vmatprep.subr.mxu0 %v3332_v42 }
 0x667   :  { %v1814_v10 = vld [vmem:[#allocation4 + $0x28] sm:$0xff]  ;;  %2084 = vmatpush3.msra.mxu0 %v3338_v58 }
 0x668   :  { %2085 = vmatprep.subr.mxu0 %v3346_v37 }
 0x67b   :  { %331 = vperm.xlu0 %2349, %v328_v44  }
 0x67f   :  { %694 = vperm.xlu0 %2349, %v328_v44  }
 0x683   :  { %2508 = vset.pattern.permute.xlu0 %v2551_v18 }
 0x6c8   :  { %v1192_v24 = vpop.xlane.xlu0 %1191 }
 0x6cc   :  { %v1200_v31 = vpop.xlane.xlu0 %1199 }
 0x6ec   :  { %v1540_v61 = vpop.xlane.xlu1 %1539 }
 0x6ed   :  { %v1549_v1 = vadd.f32 %v1540_v61, %v1192_v24  ;;  %v3362_v61 = vld [vmem:[%s3612_s11 + $0xe0] sm:$0xff] }
 0x6ee   :  { %v1548_v2 = vpop.xlane.xlu0 %1547 }
 0x6ef   :  { %v1552_v22 = vmul.f32 0.001953125, %v1549_v1  ;;  %v1550_v3 = vadd.f32 %v1548_v2, %v1200_v31  ;;  %v3354_v31 = vld [vmem:[%s3612_s11 + $0x68] sm:$0xff]  ;;  %v3374_v2 = vld [vmem:[%s3612_s11 + $0x60] sm:$0xff] }
 0x6f0   :  { %v3367_v1 = vld [vmem:[%s3612_s11 + $0x108] sm:$0x1f]  ;;  %2086 = vmatpush3.msra.mxu0 %v3354_v31 }
 0x6f1   :  { %v1554_v5 = vmul.f32 %v1552_v22, %v1552_v22  ;;  %v1553_v35 = vmul.f32 0.001953125, %v1550_v3  ;;  %2226 = vmatpush3.msk.msra.mxu1 %vm1666_vm0, %v3367_v1  ;;  %2087 = vmatprep.subr.mxu0 %v3362_v61  ;;  %v3388_v3 = vld [vmem:[%s3612_s11 + $0x58] sm:$0xff] }
 0x6f2   :  { %2227 = vmatprep.subr.mxu1 %v3094_v57  ;;  %2088 = vmatpush3.msra.mxu0 %v3374_v2 }
 0x6f3   :  { %v1555_v55 = vsub.f32 %v1553_v35, %v1554_v5  ;;  %v3395_v5 = vld [vmem:[%s3612_s11 + $0xd0] sm:$0xff] }
 0x6f4   :  { %v3401_v35 = vld [vmem:[%s3612_s11 + $0x50] sm:$0xff] }
 0x6f5   :  { %v1556_v49 = vmax.f32 %v1555_v55, 0.0  ;;  %v3407_v55 = vld [vmem:[%s3612_s11 + $0xc8] sm:$0xff] }
 0x6f6   :  { %v332_v38 = vpop.permute.xlu0 %331 }
 0x6f7   :  { %v1557_v29 = vadd.f32 1e-05, %v1556_v49  ;;  %v394_v0 = vadd.f32 %v2897_v52, %v332_v38  ;;  %v396_v60 = vadd.f32 %v2899_v54, %v332_v38  ;;  %v435_v63 = vadd.f32 %v2895_v51, %v332_v38  ;;  %v1551_v52 = vld [vmem:[%s3609_s8] sm:$0xff]  ;;  %v3413_v49 = vld [vmem:[%s3612_s11 + $0x48] sm:$0xff] }
 0x6f8   :  { %v3419_v38 = vld [vmem:[%s3612_s11 + $0xc0] sm:$0xff] }
 0x6f9   :  { %2511 = vrsqrt.f32 %v1557_v29  ;;  %442 = vst.msk [vmem:[#allocation3 + $0x10] sm:$0xff] %vm322_vm13, %v435_v63  ;;  %v3425_v29 = vld [vmem:[%s3612_s11 + $0x40] sm:$0xff]  ;;  %v3443_v63 = vld [vmem:[%s3612_s11 + $0x38] sm:$0xff] }
 0x6fa   :  { %v695_v13 = vpop.permute.xlu0 %694 }
 0x6fb   :  { %v755_v41 = vadd.f32 %v3231_v47, %v695_v13  ;;  %v757_v46 = vadd.f32 %v3236_v53, %v695_v13  ;;  %v796_v12 = vadd.f32 %v3234_v48, %v695_v13  ;;  %v1602_v48 = vld [vmem:[#allocation4 + $0x10] sm:$0xff] }
 0x6fc   :  { %v3450_v13 = vld [vmem:[%s3612_s11 + $0xb0] sm:$0xff] }
 0x6fd   :  { %804 = vst.msk [vmem:[#allocation3 + $0x28] sm:$0xff] %vm322_vm13, %v796_v12  ;;  %v3469_v12 = vld [vmem:[%s3612_s11 + $0x28] sm:$0xff] }
 0x700   :  { %v1624_v59 = vld [vmem:[#allocation3 + $0x10] sm:$0xff] }
 0x704   :  { %v1826_v8 = vld [vmem:[#allocation3 + $0x28] sm:$0xff] }
 0x706   :  { %v2512_v54 = vpop.eup %2511 }
 0x707   :  { %v1559_v51 = vmul.f32 %v2512_v54, %v1551_v52  ;;  %v3487_v54 = vld [vmem:[%s3612_s11 + $0x98] sm:$0xff] }
 0x709   :  { %v1560_v36 = vmul.f32 %v1559_v51, %v1552_v22  ;;  %v3380_v22 = vld [vmem:[%s3612_s11 + $0xd8] sm:$0xff] }
 0x70a   :  { %2089 = vmatprep.subr.mxu0 %v3380_v22 }
 0x70b   :  { %1562 = vrot.lane.b32.xlu1 %v1560_v36, %s2548_s13  ;;  %2090 = vmatpush3.msra.mxu0 %v3388_v3 }
 0x70c   :  { %2091 = vmatprep.subr.mxu0 %v3395_v5 }
 0x70d   :  { %2092 = vmatpush3.msra.mxu0 %v3401_v35 }
 0x70e   :  { %2093 = vmatprep.subr.mxu0 %v3407_v55 }
 0x70f   :  { %1605 = vperm.xlu1 %2486, %v1559_v51   ;;  %2094 = vmatpush3.msra.mxu0 %v3413_v49  ;;  %v3493_v51 = vld [vmem:[%s3612_s11 + $0x18] sm:$0xff] }
 0x710   :  { %2095 = vmatprep.subr.mxu0 %v3419_v38 }
 0x711   :  { %2096 = vmatpush3.msra.mxu0 %v3425_v29 }
 0x713   :  { %2487 = vset.pattern.permute.xlu1 %v2551_v18  ;;  %v3475_v18 = vld [vmem:[%s3612_s11 + $0xa0] sm:$0xff] }
 0x77d   :  { %v1563_v47 = vpop.permute.xlu1 %1562 }
 0x77e   :  { %v1565_v30 = vsub.f32 %v1551_v52, %v1563_v47  ;;  %v3481_v52 = vld [vmem:[%s3612_s11 + $0x20] sm:$0xff]  ;;  %v3499_v47 = vld [vmem:[%s3612_s11 + $0x90] sm:$0xff] }
 0x780   :  { %1613 = vperm.xlu1 %2487, %v1565_v30  }
 0x78a   :  { %v1606_v53 = vpop.permute.xlu1 %1605 }
 0x78b   :  { %v1608_v9 = vmul.f32 %v1606_v53, %v3258_v50  ;;  %v1609_v19 = vmul.f32 %v1606_v53, %v3264_v45  ;;  %v1815_v62 = vmul.f32 %v1606_v53, %v3273_v17  ;;  %v1816_v21 = vmul.f32 %v1606_v53, %v3276_v39 }
 0x78c   :  { %v1610_v23 = vmul.f32 %v1606_v53, %v1602_v48  ;;  %v1817_v25 = vmul.f32 %v1814_v10, %v1606_v53 }
 0x7fb   :  { %v1614_v26 = vpop.permute.xlu1 %1613 }
 0x7fc   :  { %v1616_v27 = vadd.f32 %v1614_v26, %v1608_v9  ;;  %v1617_v32 = vadd.f32 %v1614_v26, %v1609_v19  ;;  %v1818_v34 = vadd.f32 %v1815_v62, %v1614_v26  ;;  %v1819_v14 = vadd.f32 %v1816_v21, %v1614_v26  ;;  %v3508_v62 = vld [vmem:[%s3612_s11 + $0x10] sm:$0xff]  ;;  %v3513_v21 = vld [vmem:[%s3612_s11 + $0x88] sm:$0xff] }
 0x7fd   :  { %v1618_v15 = vadd.f32 %v1614_v26, %v1610_v23  ;;  %v1820_v6 = vadd.f32 %v1817_v25, %v1614_v26  ;;  %v3518_v23 = vld [vmem:[%s3612_s11 + $0x8] sm:$0xff] }
 0x7fe   :  { %v1620_v11 = vmax.f32 %v1617_v32, 0.0  ;;  %v1822_v4 = vmax.f32 %v1819_v14, 0.0  ;;  %v1619_v20 = vmax.f32 %v1616_v27, 0.0  ;;  %v1821_v7 = vmax.f32 %v1818_v34, 0.0  ;;  %v3529_v34 = vld [vmem:[%s3612_s11 + $0x80] sm:$0xff] }
 0x7ff   :  { %v1621_v50 = vmax.f32 %v1618_v15, 0.0  ;;  %v1823_v56 = vmax.f32 %v1820_v6, 0.0 }
 0x800   :  { %v3307_v45 = vadd.f32 %v1620_v11, %v396_v60  ;;  %v3309_v17 = vadd.f32 %v1822_v4, %v757_v46  ;;  %v3315_v33 = vadd.f32 %v1619_v20, %v394_v0  ;;  %v3317_v40 = vadd.f32 %v1821_v7, %v755_v41  ;;  %v3433_v0 = vld [vmem:[%s3612_s11 + $0xb8] sm:$0xff]  ;;  %v3438_v60 = vld [vmem:[%s3612_s11 + $0x100] sm:$0xff]  ;;  %v3457_v41 = vld [vmem:[%s3612_s11 + $0x30] sm:$0xff] }
 0x801   :  { %v3311_v39 = vadd.f32 %v1624_v59, %v1621_v50  ;;  %v3340_v44 = vadd.f32 %v1826_v8, %v1823_v56  ;;  %2097 = vmatprep.subr.mxu0 %v3433_v0  ;;  %2228 = vmatpush3.msra.mxu1 %v3438_v60  ;;  %v3463_v46 = vld [vmem:[%s3612_s11 + $0xa8] sm:$0xff]  ;;  %v3536_v11 = vld [vmem:[%s3612_s11] sm:$0xff]  ;;  %s2552_s11 = smov [#allocation6]  }
 0x802   :  { %v2488_v16 = vpack.i.bf16 %v3309_v17, %v3307_v45  ;;  %v2493_v24 = vpack.i.bf16 %v3317_v40, %v3315_v33  ;;  %2098 = vmatpush3.msra.mxu0 %v3443_v63  ;;  %2119 = vmatprep.subr.mxu1 %v1597_v43 }
 0x803   :  { %1635 = vrot.lane.b32.xlu1 %v3311_v39, %s2543_s26  ;;  %2099 = vmatprep.subr.mxu0 %v3450_v13 }
 0x804   :  { %2489 = vrot.lane.b32.xlu0 %v2488_v16, %s2543_s26  ;;  %2100 = vmatpush3.msra.mxu0 %v3457_v41 }
 0x805   :  { %2101 = vmatprep.subr.mxu0 %v3463_v46 }
 0x806   :  { %2102 = vmatpush3.msra.mxu0 %v3469_v12 }
 0x807   :  { %1837 = vrot.lane.b32.xlu1 %v3340_v44, %s2543_s26  ;;  %2103 = vmatprep.subr.mxu0 %v3475_v18 }
 0x808   :  { %2494 = vrot.lane.b32.xlu0 %v2493_v24, %s2543_s26  ;;  %2104 = vmatpush3.msra.mxu0 %v3481_v52 }
 0x809   :  { %2105 = vmatprep.subr.mxu0 %v3487_v54 }
 0x80a   :  { %2106 = vmatpush3.msra.mxu0 %v3493_v51 }
 0x80b   :  { %2107 = vmatprep.subr.mxu0 %v3499_v47 }
 0x80c   :  { %2108 = vmatpush3.msra.mxu0 %v3508_v62 }
 0x80d   :  { %2109 = vmatprep.subr.mxu0 %v3513_v21 }
 0x80e   :  { %2110 = vmatpush3.msra.mxu0 %v3518_v23 }
 0x80f   :  { %2111 = vmatprep.subr.mxu0 %v3529_v34 }
 0x810   :  { %2112 = vmatpush3.msra.mxu0 %v3536_v11 }
 0x811   :  { %2232 = vmatprep.subr.mxu0 %v3094_v57 }
 0x875   :  { %v1636_v36 = vpop.permute.xlu1 %1635 }
 0x876   :  { %v1644_v30 = vmax.f32 %v3311_v39, %v1636_v36  ;;  %v2490_v53 = vpop.permute.xlu0 %2489 }
 0x877   :  { %v2492_v48 = vunpack.i.h.bf16 %v2490_v53  ;;  %v2491_v10 = vunpack.i.l.bf16 %v2490_v53 }
 0x878   :  { %1652 = vrot.lane.b32.xlu1 %v1644_v30, %s2542_s23 }
 0x879   :  { %v1638_v9 = vsel %vm101_vm10, %v2491_v10, %v1636_v36  ;;  %v1838_v19 = vpop.permute.xlu1 %1837 }
 0x87a   :  { %v1643_v25 = vmax.f32 %v3307_v45, %v1638_v9  ;;  %v1840_v26 = vsel %vm101_vm10, %v2492_v48, %v1838_v19  ;;  %v3523_v27 = vmax.f32 %v3340_v44, %v1838_v19  ;;  %v2495_v32 = vpop.permute.xlu0 %2494 }
 0x87b   :  { %v1845_v14 = vmax.f32 %v3309_v17, %v1840_v26  ;;  %v2497_v15 = vunpack.i.h.bf16 %v2495_v32  ;;  %v2496_v6 = vunpack.i.l.bf16 %v2495_v32 }
 0x87c   :  { %1854 = vrot.lane.b32.xlu1 %v3523_v27, %s2542_s23 }
 0x87d   :  { %v2498_v4 = vpack.i.bf16 %v1845_v14, %v1643_v25  ;;  %v1637_v20 = vsel %vm101_vm10, %v2496_v6, %v2491_v10  ;;  %v1839_v7 = vsel %vm101_vm10, %v2497_v15, %v2492_v48 }
 0x87e   :  { %v1642_v50 = vmax.f32 %v3315_v33, %v1637_v20  ;;  %v3546_v59 = vmax.f32 %v3317_v40, %v1839_v7 }
 0x87f   :  { %2499 = vrot.lane.b32.xlu0 %v2498_v4, %s2542_s23 }
 0x880   :  { %v2503_v45 = vpack.i.bf16 %v3546_v59, %v1642_v50 }
 0x883   :  { %2504 = vrot.lane.b32.xlu0 %v2503_v45, %s2542_s23  ;;  %s2014_s23 = sshll.u32 %s2552_s11, 4  ;;  %s2015_s23 = int_to_ptr.vmem [resolvable:$true] %s2014_s23 }
 0x884   :  { %s2514_s28 = scalar_lea.vmem %s2015_s23, 256  ;;  %p2519_p1 = scmp.lt.s32.totalorder %s2015_s23, %s2015_s23 }
 0x885   :  { %p2515_p0 = scmp.ne.s32.totalorder %s2015_s23, %s2514_s28  ;;  %p2520_p2 = scmp.lt.s32.totalorder %s2514_s28, %s2514_s28 }
 0x887   :  { %p2521_p3 = por %p2520_p2, %p2519_p1 }
 0x889   :  { %p2522_p4 = pnand %p2521_p3, %p2515_p0 }
 0x8ea   :  { %v1653_v17 = vpop.permute.xlu1 %1652 }
 0x8eb   :  { %v1661_v39 = vmax.f32 %v1644_v30, %v1653_v17 }
 0x8ed   :  { %2230 = vmatmul.mubr.msk.f32.vlgmr.msra.gmra.mxu1 %vm1662_vm2, %v1661_v39 }
 0x8ee   :  { %2120 = vmatpush3.msra.mxu1 %v3327_v28  ;;  %v1855_v40 = vpop.permute.xlu1 %1854 }
 0x8ef   :  { %2121 = vmatprep.subr.mxu1 %v3332_v42 }
 0x8f0   :  { %2122 = vmatpush3.msra.mxu1 %v3338_v58 }
 0x8f1   :  { %2123 = vmatprep.subr.mxu1 %v3346_v37  ;;  %v2500_v56 = vpop.permute.xlu0 %2499 }
 0x8f2   :  { %2124 = vmatpush3.msra.mxu1 %v3354_v31  ;;  %v2502_v16 = vunpack.i.h.bf16 %v2500_v56  ;;  %v2501_v33 = vunpack.i.l.bf16 %v2500_v56  ;;  %v1863_v31 = vmax.f32 %v3523_v27, %v1855_v40 }
 0x8f3   :  { %2125 = vmatprep.subr.mxu1 %v3362_v61 }
 0x8f4   :  { %2126 = vmatpush3.msra.mxu1 %v3374_v2  ;;  %v1655_v43 = vsel %vm125_vm8, %v2501_v33, %v1653_v17  ;;  %v1857_v28 = vsel %vm125_vm8, %v2502_v16, %v1855_v40 }
 0x8f5   :  { %2127 = vmatprep.subr.mxu1 %v3380_v22  ;;  %v2505_v42 = vpop.permute.xlu0 %2504  ;;  %v1660_v8 = vmax.f32 %v1643_v25, %v1655_v43  ;;  %v1862_v58 = vmax.f32 %v1845_v14, %v1857_v28 }
 0x8f6   :  { %2128 = vmatpush3.msra.mxu1 %v3388_v3  ;;  %v2506_v44 = vunpack.i.l.bf16 %v2505_v42  ;;  %v2507_v61 = vunpack.i.h.bf16 %v2505_v42 }
 0x8f7   :  { %2129 = vmatprep.subr.mxu1 %v3395_v5  ;;  %1734 = vmatprep.mubr.f32.mxu0 %v1660_v8 }
 0x8f8   :  { %v1654_v37 = vsel %vm125_vm8, %v2506_v44, %v2501_v33  ;;  %2130 = vmatpush3.msra.mxu1 %v3401_v35  ;;  %1931 = vmatprep.mubr.f32.mxu1 %v1862_v58 }
 0x8f9   :  { %v1659_v24 = vmax.f32 %v1642_v50, %v1654_v37  ;;  %2131 = vmatprep.subr.mxu1 %v3407_v55 }
 0x8fa   :  { %2132 = vmatpush3.msra.mxu1 %v3413_v49 }
 0x8fb   :  { %2133 = vmatprep.subr.mxu1 %v3419_v38  ;;  %1735 = vmatmul.mubr.f32.vlgmr.msra.gmra.mxu0 %v1659_v24 }
 0x8fc   :  { %2134 = vmatpush3.msra.mxu1 %v3425_v29  ;;  %2233 = vmatpush3.msk.msra.mxu0 %vm1666_vm0, %v3367_v1 }
 0x8fd   :  { %2135 = vmatprep.subr.mxu1 %v3433_v0  ;;  %2234 = vmatprep.subr.mxu0 %v3094_v57 }
 0x8fe   :  { %2136 = vmatpush3.msra.mxu1 %v3443_v63  ;;  %2235 = vmatpush3.msra.mxu0 %v3438_v60 }
 0x8ff   :  { %2137 = vmatprep.subr.mxu1 %v3450_v13  ;;  %2236 = vmatprep.mubr.msk.f32.mxu0 %vm2546_vm1, %v3094_v57  ;;  %v1856_v57 = vsel %vm125_vm8, %v2507_v61, %v2502_v16  ;;  %vm1810_vm1 = vcmask 523264  }
 0x900   :  { %2138 = vmatpush3.msra.mxu1 %v3457_v41  ;;  %2237 = vmatmul.mubr.msk.f32.vlgmr.msra.gmra.mxu0 %vm1662_vm2, %v1863_v31  ;;  %v1861_v1 = vmax.f32 %v3546_v59, %v1856_v57 }
 0x901   :  { %2139 = vmatprep.subr.mxu1 %v3463_v46 }
 0x902   :  { %2140 = vmatpush3.msra.mxu1 %v3469_v12 }
 0x903   :  { %2141 = vmatprep.subr.mxu1 %v3475_v18 }
 0x904   :  { %2142 = vmatpush3.msra.mxu1 %v3481_v52 }
 0x905   :  { %2143 = vmatprep.subr.mxu1 %v3487_v54 }
 0x906   :  { %2144 = vmatpush3.msra.mxu1 %v3493_v51 }
 0x907   :  { %2145 = vmatprep.subr.mxu1 %v3499_v47 }
 0x908   :  { %2146 = vmatpush3.msra.mxu1 %v3508_v62 }
 0x909   :  { %2147 = vmatprep.subr.mxu1 %v3513_v21 }
 0x90a   :  { %2148 = vmatpush3.msra.mxu1 %v3518_v23 }
 0x90b   :  { %2149 = vmatprep.subr.mxu1 %v3529_v34 }
 0x90c   :  { %2150 = vmatpush3.msra.mxu1 %v3536_v11 }
 0x90d   :  { %1932 = vmatmul.mubr.f32.vlgmr.msra.gmra.mxu1 %v1861_v1 }
 0x9ad   :  { %v1806_v2 = vpop.f32.mrf.mxu1 }
 0x9af   :  { %v2231_v22 = vpop.f32.mrf.mxu1 }
 0x9bb   :  { %v2113_v3 = vpop.f32.mrf.mxu0 }
 0x9bd   :  { %v2114_v5 = vpop.f32.mrf.mxu0 }
 0x9be   :  { %v2115_v35 = vadd.f32 %v2114_v5, %v2113_v3 }
 0x9c0   :  { %v1807_v55 = vadd.f32 %v2115_v35, %v1806_v2  ;;  %v2003_v49 = vpop.f32.mrf.mxu0 }
 0x9c2   :  { %1811 = vst.msk [vmem:[#allocation6] sm:$0xff] %vm1810_vm1, %v1807_v55  ;;  %v2238_v38 = vpop.f32.mrf.mxu0 }
 0x9cd   :  { %v2151_v29 = vpop.f32.mrf.mxu1 }
 0x9cf   :  { %v2152_v0 = vpop.f32.mrf.mxu1 }
 0x9d0   :  { %v2153_v60 = vadd.f32 %v2152_v0, %v2151_v29 }
 0x9d2   :  { %v2004_v63 = vadd.f32 %v2153_v60, %v2003_v49 }
 0x9d4   :  { %2008 = vst.msk [vmem:[#allocation6 + $0x8] sm:$0xff] %vm1810_vm1, %v2004_v63 }
 0x9d5   :  { %2525 = shalt.err (!%p2522_p4)
}
 0x9d6   :  { %s2553_s3 = smov 128   ;;  %s2554_s29 = smov 8  }
 0x9d7   :  { %2020 = dma.vmem_to_hbm [thread:$0]  %s2015_s23, 256, %s3613_s12, [#allocation7], %s2553_s3, %s2553_s3, %s2554_s29  }
 0x9d8   :  { %2534 = dma.done.wait [#allocation7], 256  }
 0x9d9   :  { %2535 = vsyncadd [#allocation7], 4294967040 }
 0x9da   :  { %2024 = vsyncpa [#allocation7], 1 }

</bundles_post_ra>
